<compile_context>
chip_gen: v7x
topology: tpu7x:2x2x1
jax: 0.10.0
libtpu: 0.0.40
codegen_flags: <defaults>
</compile_context>

<pallas_src>
import functools

import jax
import jax.numpy as jnp
from jax import lax
from jax.experimental import pallas as pl
from jax.experimental.pallas import tpu as pltpu

# ---------------- model hyper-parameters (small, synthetic) ----------------
STATE_DIM = 6
ACTION_DIM = 4
EMBED_DIM = 32
NUM_LAYERS = 2          # -> num_layers // 2 = 1 layer per sub-transformer
NUM_HEADS = 2
HIDDEN_DIM = 64
MAX_SEQ_LEN = 16
NUM_OPTIONS = 4
OPTION_DURATION = 4
LN_EPS = 1e-5

# lane layout of the fused (S, 128) output slab
OUT_W = 128
LANE_ACT0 = 0
LANE_OPT0 = ACTION_DIM
LANE_TERM = ACTION_DIM + NUM_OPTIONS
LANE_VAL = LANE_TERM + 1
LANE_HID0 = LANE_VAL + 1
assert LANE_HID0 + EMBED_DIM <= OUT_W

# packed-slab geometry
_WL_WIDTH = max(EMBED_DIM, HIDDEN_DIM)        # 64 columns
_WL_ROWS = 5 * EMBED_DIM + HIDDEN_DIM         # 224 rows/layer: wq wk wv wo w1 w2
_BL_ROWS = 10                                  # rows/layer: bq bk bv bo ln1g ln1b b1 b2 ln2g ln2b


# ------------------------------ kernel --------------------------------------
def _layernorm(x, g, b):
    mu = jnp.mean(x, axis=-1, keepdims=True)
    var = jnp.mean((x - mu) ** 2, axis=-1, keepdims=True)
    return (x - mu) * lax.rsqrt(var + LN_EPS) * g + b


def fused_forward_kernel(*refs, num_heads, n_high, n_low, use_options, seq):
    """Whole HierarchicalTransformer forward for one batch element, in VMEM."""
    f32 = jnp.float32
    if use_options:
        (options_ref, states_ref, wslab_ref, bslab_ref, mslab_ref, out_ref) = refs
    else:
        (states_ref, wslab_ref, bslab_ref, mslab_ref, out_ref) = refs
        options_ref = None

    E, H, Ds, S = EMBED_DIM, HIDDEN_DIM, STATE_DIM, seq
    Dh = E // num_heads
    scale = 1.0 / float(Dh) ** 0.5
    b = pl.program_id(0)

    # ---- misc-slab static row offsets (must match wrapper packing) ----
    R_EMBW = 0
    R_EMBB = R_EMBW + Ds
    R_POS = R_EMBB + 1
    R_OPTE = R_POS + S
    R_WOPT = R_OPTE + NUM_OPTIONS
    R_WTERM = R_WOPT + E
    R_WLOW = R_WTERM + E
    R_BHEAD = R_WLOW + E

    # ---- embedding: state linear projection + positional embedding ----
    # TODO(synk): StateActionEmbedding internals not provided; standard
    # state-linear + positional-embedding reconstruction (actions=None path).
    x = states_ref[0].astype(f32)                                   # (S, Ds)
    emb_w = mslab_ref[R_EMBW:R_EMBW + Ds, 0:E]
    emb_b = mslab_ref[R_EMBB:R_EMBB + 1, 0:E]
    pos = mslab_ref[R_POS:R_POS + S, 0:E]
    x = jnp.dot(x, emb_w, preferred_element_type=f32) + emb_b + pos  # (S, E)

    # ---- causal mask for head-stacked scores, generated in-kernel ----
    # row r of the stacked (num_heads*S, S) score matrix is query position r % S
    srow = lax.broadcasted_iota(jnp.int32, (num_heads * S, S), 0) % S
    scol = lax.broadcasted_iota(jnp.int32, (num_heads * S, S), 1)
    causal_ok = scol <= srow            # diagonal always allowed -> denom >= 1

    # per-head lane masks (compile-time constants); heads partition E exactly
    lane = lax.broadcasted_iota(jnp.int32, (1, E), 1)
    head_masks = [((lane >= h * Dh) & (lane < (h + 1) * Dh)).astype(f32)
                  for h in range(num_heads)]

    def encoder_layer(h_in, layer_idx):
        r0 = layer_idx * _WL_ROWS
        b0 = layer_idx * _BL_ROWS
        wq = wslab_ref[r0 + 0 * E:r0 + 1 * E, 0:E]
        wk = wslab_ref[r0 + 1 * E:r0 + 2 * E, 0:E]
        wv = wslab_ref[r0 + 2 * E:r0 + 3 * E, 0:E]
        wo = wslab_ref[r0 + 3 * E:r0 + 4 * E, 0:E]
        w1 = wslab_ref[r0 + 4 * E:r0 + 5 * E, 0:H]
        w2 = wslab_ref[r0 + 5 * E:r0 + 5 * E + H, 0:E]
        bq = bslab_ref[b0 + 0:b0 + 1, 0:E]
        bk = bslab_ref[b0 + 1:b0 + 2, 0:E]
        bv = bslab_ref[b0 + 2:b0 + 3, 0:E]
        bo = bslab_ref[b0 + 3:b0 + 4, 0:E]
        ln1g = bslab_ref[b0 + 4:b0 + 5, 0:E]
        ln1b = bslab_ref[b0 + 5:b0 + 6, 0:E]
        b1 = bslab_ref[b0 + 6:b0 + 7, 0:H]
        b2 = bslab_ref[b0 + 7:b0 + 8, 0:E]
        ln2g = bslab_ref[b0 + 8:b0 + 9, 0:E]
        ln2b = bslab_ref[b0 + 9:b0 + 10, 0:E]

        # q/k/v from separate row-block weights (no lane-offset qkv slices)
        q = jnp.dot(h_in, wq, preferred_element_type=f32) + bq      # (S, E)
        k = jnp.dot(h_in, wk, preferred_element_type=f32) + bk
        v = jnp.dot(h_in, wv, preferred_element_type=f32) + bv

        # stack masked per-head Q along M -> one QK^T and one P@V per layer.
        # (q*mask_h) @ k^T contracts only head h's columns; disjoint masks.
        q_stk = jnp.concatenate([q * hm for hm in head_masks], axis=0)   # (H*S, E)
        s = lax.dot_general(q_stk, k, (((1,), (1,)), ((), ())),
                            preferred_element_type=f32) * scale          # (H*S, S)
        s = jnp.where(causal_ok, s, -1e30)
        s = s - jnp.max(s, axis=-1, keepdims=True)
        p = jnp.exp(s)
        # rows always include the diagonal -> sum >= 1, no NaN risk
        p = p * pl.reciprocal(jnp.sum(p, axis=-1, keepdims=True), approx=True)
        ctx_stk = jnp.dot(p, v, preferred_element_type=f32)              # (H*S, E)
        # per-head block of ctx_stk masked to head h's columns, then summed
        ctx = jnp.zeros((S, E), f32)
        for h, hm in enumerate(head_masks):
            ctx = ctx + ctx_stk[h * S:(h + 1) * S, :] * hm

        attn = jnp.dot(ctx, wo, preferred_element_type=f32) + bo
        y = _layernorm(h_in + attn, ln1g, ln1b)
        ff = jnp.maximum(jnp.dot(y, w1, preferred_element_type=f32) + b1, 0.0)
        ff = jnp.dot(ff, w2, preferred_element_type=f32) + b2
        return _layernorm(y + ff, ln2g, ln2b)

    # ---- high-level transformer ----
    h = x
    for l in range(n_high):
        h = encoder_layer(h, l)

    # ---- temporal abstraction: option-embedding add (SMEM-indexed row) ----
    h_abs = h
    if use_options:
        opt_id = options_ref[b]                                     # SMEM scalar
        opt_row = mslab_ref[pl.ds(R_OPTE + opt_id, 1), :][:, 0:E]   # (1, E)
        h_abs = h + opt_row

    # ---- low-level transformer ----
    low = h_abs
    for l in range(n_low):
        low = encoder_layer(low, n_high + l)

    # ---- fused lane-dense output slab (single full-width store) ----
    # Head weights were pre-placed at their output lanes in the wrapper:
    #   w_opt  (from h):     option logits at lanes [LANE_OPT0, +NUM_OPTIONS)
    #   w_term (from h_abs): termination logit at lane LANE_TERM
    #   w_low  (from low):   action lanes, value lane, identity -> hidden lanes
    w_opt = mslab_ref[R_WOPT:R_WOPT + E, :]      # (E, 128)
    w_term = mslab_ref[R_WTERM:R_WTERM + E, :]   # (E, 128)
    w_low = mslab_ref[R_WLOW:R_WLOW + E, :]      # (E, 128)
    b_head = mslab_ref[R_BHEAD:R_BHEAD + 1, :]   # (1, 128)

    out = (jnp.dot(h, w_opt, preferred_element_type=f32)
           + jnp.dot(h_abs, w_term, preferred_element_type=f32)
           + jnp.dot(low, w_low, preferred_element_type=f32)
           + b_head)                                                 # (S, 128)
    out_lane = lax.broadcasted_iota(jnp.int32, (S, OUT_W), 1)
    out = jnp.where(out_lane == LANE_TERM, jax.nn.sigmoid(out), out)
    out_ref[0] = out.astype(out_ref.dtype)


# ------------------------------ wrapper --------------------------------------
def _pad_cols(x, w):
    return jnp.pad(x, ((0, 0), (0, w - x.shape[1])))


def hierarchical_forward(params, states, options=None):
    B, S, Ds = states.shape
    assert S <= MAX_SEQ_LEN, "sequence length exceeds max_seq_len"
    assert EMBED_DIM % NUM_HEADS == 0
    assert (EMBED_DIM // NUM_HEADS) * NUM_HEADS == EMBED_DIM
    E, H = EMBED_DIM, HIDDEN_DIM
    f32 = jnp.float32
    use_options = options is not None

    # ---- packed per-layer weight slab and bias/LN slab ----
    def pack_layer_w(lyr):
        return jnp.concatenate(
            [_pad_cols(lyr[k], _WL_WIDTH) for k in ("wq", "wk", "wv", "wo", "w1", "w2")],
            axis=0)

    def pack_layer_b(lyr):
        keys = ("bq", "bk", "bv", "bo", "ln1g", "ln1b", "b1", "b2", "ln2g", "ln2b")
        return jnp.concatenate([_pad_cols(lyr[k], _WL_WIDTH) for k in keys], axis=0)

    layers = list(params["high_layers"]) + list(params["low_layers"])
    wslab = jnp.concatenate([pack_layer_w(l) for l in layers], axis=0).astype(f32)
    bslab = jnp.concatenate([pack_layer_b(l) for l in layers], axis=0).astype(f32)

    # ---- misc slab: embeddings + lane-placed fused head weights ----
    w_opt_pad = jnp.zeros((E, OUT_W), f32).at[:, LANE_OPT0:LANE_OPT0 + NUM_OPTIONS].set(
        params["opt_w"])
    w_term_pad = jnp.zeros((E, OUT_W), f32).at[:, LANE_TERM:LANE_TERM + 1].set(
        params["term_w"])
    w_low_pad = (jnp.zeros((E, OUT_W), f32)
                 .at[:, LANE_ACT0:LANE_ACT0 + ACTION_DIM].set(params["act_w"])
                 .at[:, LANE_VAL:LANE_VAL + 1].set(params["val_w"])
                 .at[:, LANE_HID0:LANE_HID0 + E].set(jnp.eye(E, dtype=f32)))
    b_head_pad = (jnp.zeros((1, OUT_W), f32)
                  .at[:, LANE_OPT0:LANE_OPT0 + NUM_OPTIONS].set(params["opt_b"])
                  .at[:, LANE_TERM:LANE_TERM + 1].set(params["term_b"])
                  .at[:, LANE_ACT0:LANE_ACT0 + ACTION_DIM].set(params["act_b"])
                  .at[:, LANE_VAL:LANE_VAL + 1].set(params["val_b"]))

    mslab = jnp.concatenate([
        _pad_cols(params["emb_w"], OUT_W),          # Ds rows
        _pad_cols(params["emb_b"], OUT_W),          # 1 row
        _pad_cols(params["pos"][:S], OUT_W),        # S rows
        _pad_cols(params["option_emb"], OUT_W),     # NUM_OPTIONS rows
        w_opt_pad, w_term_pad, w_low_pad,           # 3*E rows
        b_head_pad,                                 # 1 row
    ], axis=0).astype(f32)

    kern = functools.partial(
        fused_forward_kernel, num_heads=NUM_HEADS,
        n_high=len(params["high_layers"]), n_low=len(params["low_layers"]),
        use_options=use_options, seq=S)

    tiled3 = lambda b, *_: (b, 0, 0)
    whole2 = lambda b, *_: (0, 0)
    grid_spec = pltpu.PrefetchScalarGridSpec(
        num_scalar_prefetch=1 if use_options else 0,
        grid=(B,),
        in_specs=[
            pl.BlockSpec((1, S, Ds), tiled3),        # states, per-batch block
            pl.BlockSpec(wslab.shape, whole2),       # layer weights (resident)
            pl.BlockSpec(bslab.shape, whole2),       # layer biases/LN (resident)
            pl.BlockSpec(mslab.shape, whole2),       # misc/head slab (resident)
        ],
        out_specs=pl.BlockSpec((1, S, OUT_W), tiled3),
    )

    call_args = []
    if use_options:
        call_args.append(options.astype(jnp.int32))
    call_args += [states.astype(f32), wslab, bslab, mslab]

    out = pl.pallas_call(
        kern,
        grid_spec=grid_spec,
        out_shape=jax.ShapeDtypeStruct((B, S, OUT_W), f32),
        compiler_params=pltpu.CompilerParams(
            dimension_semantics=("parallel",),
            vmem_limit_bytes=4 * 1024 * 1024,
        ),
    )(*call_args)

    return dict(
        action_preds=out[..., LANE_ACT0:LANE_ACT0 + ACTION_DIM],
        option_preds=out[..., LANE_OPT0:LANE_OPT0 + NUM_OPTIONS],
        termination_probs=out[..., LANE_TERM],
        values=out[..., LANE_VAL],
        hidden_states=out[..., LANE_HID0:LANE_HID0 + E],
    )


# ------------------------------ parameters ----------------------------------
def _dense(key, shape, scale=0.02):
    return scale * jax.random.normal(key, shape, dtype=jnp.float32)


def _init_layer(key, E, H):
    ks = jax.random.split(key, 6)
    return dict(
        wq=_dense(ks[0], (E, E)), bq=jnp.zeros((1, E), jnp.float32),
        wk=_dense(ks[1], (E, E)), bk=jnp.zeros((1, E), jnp.float32),
        wv=_dense(ks[2], (E, E)), bv=jnp.zeros((1, E), jnp.float32),
        wo=_dense(ks[3], (E, E)), bo=jnp.zeros((1, E), jnp.float32),
        ln1g=jnp.ones((1, E), jnp.float32), ln1b=jnp.zeros((1, E), jnp.float32),
        w1=_dense(ks[4], (E, H)), b1=jnp.zeros((1, H), jnp.float32),
        w2=_dense(ks[5], (H, E)), b2=jnp.zeros((1, E), jnp.float32),
        ln2g=jnp.ones((1, E), jnp.float32), ln2b=jnp.zeros((1, E), jnp.float32),
    )


def init_params(key):
    E, H = EMBED_DIM, HIDDEN_DIM
    n_sub = NUM_LAYERS // 2
    keys = jax.random.split(key, 10 + 2 * n_sub)
    return dict(
        emb_w=_dense(keys[0], (STATE_DIM, E)),
        emb_b=jnp.zeros((1, E), jnp.float32),
        pos=_dense(keys[1], (MAX_SEQ_LEN, E)),
        opt_w=_dense(keys[2], (E, NUM_OPTIONS)),
        opt_b=jnp.zeros((1, NUM_OPTIONS), jnp.float32),
        option_emb=_dense(keys[3], (NUM_OPTIONS, E), scale=1.0),
        term_w=_dense(keys[4], (E, 1)),
        term_b=jnp.zeros((1, 1), jnp.float32),
        act_w=_dense(keys[5], (E, ACTION_DIM)),
        act_b=jnp.zeros((1, ACTION_DIM), jnp.float32),
        val_w=_dense(keys[6], (E, 1)),
        val_b=jnp.zeros((1, 1), jnp.float32),
        high_layers=[_init_layer(keys[10 + i], E, H) for i in range(n_sub)],
        low_layers=[_init_layer(keys[10 + n_sub + i], E, H) for i in range(n_sub)],
    )


# ------------------------------ main -----------------------------------------
if __name__ == "__main__":
    B, S = 2, 8
    key = jax.random.PRNGKey(0)
    k_states, k_params = jax.random.split(key)
    states = jax.random.normal(k_states, (B, S, STATE_DIM), dtype=jnp.float32)
    options = jnp.array([1, 3], dtype=jnp.int32)

    params = init_params(k_params)
    fwd = jax.jit(hierarchical_forward)
    out = jax.block_until_ready(fwd(params, states, options))

    assert out["action_preds"].shape == (B, S, ACTION_DIM)
    assert out["option_preds"].shape == (B, S, NUM_OPTIONS)
    assert out["termination_probs"].shape == (B, S)
    assert out["values"].shape == (B, S)
    assert out["hidden_states"].shape == (B, S, EMBED_DIM)
    assert bool(jnp.all(jnp.isfinite(out["action_preds"])))
    assert bool(jnp.all(jnp.isfinite(out["hidden_states"])))
    assert bool(jnp.all((out["termination_probs"] >= 0) & (out["termination_probs"] <= 1)))

    print("KERNEL_OK")
</pallas_src>

<mosaic_0001>
module attributes {stable_mosaic.version = 11 : i64} {
  func.func @fused_forward_kernel(%arg0: i32, %arg1: memref<2xi32, #tpu.memory_space<smem>>, %arg2: memref<1x8x6xf32, #tpu.memory_space<vmem>>, %arg3: memref<448x64xf32, #tpu.memory_space<vmem>>, %arg4: memref<20x64xf32, #tpu.memory_space<vmem>>, %arg5: memref<116x128xf32, #tpu.memory_space<vmem>>, %arg6: memref<1x8x128xf32, #tpu.memory_space<vmem>>) attributes {dimension_semantics = [#tpu.dimension_semantics<parallel>], iteration_bounds = array<i64: 2>, scalar_prefetch = 1 : i64, scratch_operands = 0 : i64, tpu.core_type = #tpu.core_type<tc>, window_params = [{transform_indices = @transform_0, window_bounds = array<i64: 1, 8, 6>}, {pipeline_mode = #tpu.pipeline_mode<synchronous>, transform_indices = @transform_1, window_bounds = array<i64: 448, 64>}, {pipeline_mode = #tpu.pipeline_mode<synchronous>, transform_indices = @transform_2, window_bounds = array<i64: 20, 64>}, {pipeline_mode = #tpu.pipeline_mode<synchronous>, transform_indices = @transform_3, window_bounds = array<i64: 116, 128>}, {transform_indices = @transform_4, window_bounds = array<i64: 1, 8, 128>}]} {
    %c0 = arith.constant 0 : index
    %c0_0 = arith.constant 0 : index
    %c0_1 = arith.constant 0 : index
    %0 = vector.load %arg2[%c0, %c0_0, %c0_1] : memref<1x8x6xf32, #tpu.memory_space<vmem>>, vector<1x8x6xf32>
    %1 = vector.shape_cast %0 : vector<1x8x6xf32> to vector<8x6xf32>
    %c0_2 = arith.constant 0 : index
    %c0_3 = arith.constant 0 : index
    %2 = vector.load %arg5[%c0_2, %c0_3] : memref<116x128xf32, #tpu.memory_space<vmem>>, vector<6x32xf32>
    %c6 = arith.constant 6 : index
    %c0_4 = arith.constant 0 : index
    %3 = vector.load %arg5[%c6, %c0_4] : memref<116x128xf32, #tpu.memory_space<vmem>>, vector<1x32xf32>
    %c7 = arith.constant 7 : index
    %c0_5 = arith.constant 0 : index
    %4 = vector.load %arg5[%c7, %c0_5] : memref<116x128xf32, #tpu.memory_space<vmem>>, vector<8x32xf32>
    %cst = arith.constant dense<0.000000e+00> : vector<8x32xf32>
    %5 = tpu.matmul %1, %2, %cst {dimension_numbers = #tpu.dot_dimension_numbers<[1], [0], [0], [1], [0, 0, 1, 1], [], []>} : vector<8x6xf32>, vector<6x32xf32>, vector<8x32xf32> -> vector<8x32xf32>
    %6 = vector.broadcast %3 : vector<1x32xf32> to vector<8x32xf32>
    %7 = arith.addf %5, %6 : vector<8x32xf32>
    %8 = arith.addf %7, %4 : vector<8x32xf32>
    %9 = tpu.iota {dimensions = array<i32: 0>} : vector<16x8xi32>
    %c8_i32 = arith.constant 8 : i32
    %c0_i32 = arith.constant 0 : i32
    %10 = arith.cmpi eq, %c8_i32, %c0_i32 : i32
    %c1_i32 = arith.constant 1 : i32
    %11 = arith.select %10, %c1_i32, %c8_i32 : i32
    %12 = vector.broadcast %11 : i32 to vector<16x8xi32>
    %13 = arith.remsi %9, %12 : vector<16x8xi32>
    %c0_i32_6 = arith.constant 0 : i32
    %14 = vector.broadcast %c0_i32_6 : i32 to vector<16x8xi32>
    %15 = arith.cmpi ne, %13, %14 : vector<16x8xi32>
    %c0_i32_7 = arith.constant 0 : i32
    %16 = vector.broadcast %c0_i32_7 : i32 to vector<16x8xi32>
    %17 = arith.cmpi slt, %13, %16 : vector<16x8xi32>
    %c0_i32_8 = arith.constant 0 : i32
    %18 = arith.cmpi slt, %11, %c0_i32_8 : i32
    %19 = vector.broadcast %18 : i1 to vector<16x8xi1>
    %20 = vector.broadcast %19 : vector<16x8xi1> to vector<16x8xi1>
    %21 = arith.xori %17, %20 : vector<16x8xi1>
    %22 = arith.andi %21, %15 : vector<16x8xi1>
    %23 = vector.broadcast %11 : i32 to vector<16x8xi32>
    %24 = arith.addi %13, %23 : vector<16x8xi32>
    %25 = arith.select %22, %24, %13 : vector<16x8xi1>, vector<16x8xi32>
    %26 = tpu.iota {dimensions = array<i32: 1>} : vector<16x8xi32>
    %27 = arith.cmpi sle, %26, %25 : vector<16x8xi32>
    %28 = tpu.iota {dimensions = array<i32: 1>} : vector<1x32xi32>
    %c0_i32_9 = arith.constant 0 : i32
    %29 = vector.broadcast %c0_i32_9 : i32 to vector<1x32xi32>
    %30 = arith.cmpi sge, %28, %29 : vector<1x32xi32>
    %c16_i32 = arith.constant 16 : i32
    %31 = vector.broadcast %c16_i32 : i32 to vector<1x32xi32>
    %32 = arith.cmpi slt, %28, %31 : vector<1x32xi32>
    %33 = arith.andi %30, %32 : vector<1x32xi1>
    %34 = arith.extui %33 : vector<1x32xi1> to vector<1x32xi32>
    %35 = arith.sitofp %34 : vector<1x32xi32> to vector<1x32xf32>
    %c16_i32_10 = arith.constant 16 : i32
    %36 = vector.broadcast %c16_i32_10 : i32 to vector<1x32xi32>
    %37 = arith.cmpi sge, %28, %36 : vector<1x32xi32>
    %c32_i32 = arith.constant 32 : i32
    %38 = vector.broadcast %c32_i32 : i32 to vector<1x32xi32>
    %39 = arith.cmpi slt, %28, %38 : vector<1x32xi32>
    %40 = arith.andi %37, %39 : vector<1x32xi1>
    %41 = arith.extui %40 : vector<1x32xi1> to vector<1x32xi32>
    %42 = arith.sitofp %41 : vector<1x32xi32> to vector<1x32xf32>
    %c0_11 = arith.constant 0 : index
    %c0_12 = arith.constant 0 : index
    %43 = vector.load %arg3[%c0_11, %c0_12] : memref<448x64xf32, #tpu.memory_space<vmem>>, vector<32x32xf32>
    %c32 = arith.constant 32 : index
    %c0_13 = arith.constant 0 : index
    %44 = vector.load %arg3[%c32, %c0_13] : memref<448x64xf32, #tpu.memory_space<vmem>>, vector<32x32xf32>
    %c64 = arith.constant 64 : index
    %c0_14 = arith.constant 0 : index
    %45 = vector.load %arg3[%c64, %c0_14] : memref<448x64xf32, #tpu.memory_space<vmem>>, vector<32x32xf32>
    %c96 = arith.constant 96 : index
    %c0_15 = arith.constant 0 : index
    %46 = vector.load %arg3[%c96, %c0_15] : memref<448x64xf32, #tpu.memory_space<vmem>>, vector<32x32xf32>
    %c128 = arith.constant 128 : index
    %c0_16 = arith.constant 0 : index
    %47 = vector.load %arg3[%c128, %c0_16] : memref<448x64xf32, #tpu.memory_space<vmem>>, vector<32x64xf32>
    %c160 = arith.constant 160 : index
    %c0_17 = arith.constant 0 : index
    %48 = vector.load %arg3[%c160, %c0_17] : memref<448x64xf32, #tpu.memory_space<vmem>>, vector<64x32xf32>
    %c0_18 = arith.constant 0 : index
    %c0_19 = arith.constant 0 : index
    %49 = vector.load %arg4[%c0_18, %c0_19] : memref<20x64xf32, #tpu.memory_space<vmem>>, vector<1x32xf32>
    %c1 = arith.constant 1 : index
    %c0_20 = arith.constant 0 : index
    %50 = vector.load %arg4[%c1, %c0_20] : memref<20x64xf32, #tpu.memory_space<vmem>>, vector<1x32xf32>
    %c2 = arith.constant 2 : index
    %c0_21 = arith.constant 0 : index
    %51 = vector.load %arg4[%c2, %c0_21] : memref<20x64xf32, #tpu.memory_space<vmem>>, vector<1x32xf32>
    %c3 = arith.constant 3 : index
    %c0_22 = arith.constant 0 : index
    %52 = vector.load %arg4[%c3, %c0_22] : memref<20x64xf32, #tpu.memory_space<vmem>>, vector<1x32xf32>
    %c4 = arith.constant 4 : index
    %c0_23 = arith.constant 0 : index
    %53 = vector.load %arg4[%c4, %c0_23] : memref<20x64xf32, #tpu.memory_space<vmem>>, vector<1x32xf32>
    %c5 = arith.constant 5 : index
    %c0_24 = arith.constant 0 : index
    %54 = vector.load %arg4[%c5, %c0_24] : memref<20x64xf32, #tpu.memory_space<vmem>>, vector<1x32xf32>
    %c6_25 = arith.constant 6 : index
    %c0_26 = arith.constant 0 : index
    %55 = vector.load %arg4[%c6_25, %c0_26] : memref<20x64xf32, #tpu.memory_space<vmem>>, vector<1x64xf32>
    %c7_27 = arith.constant 7 : index
    %c0_28 = arith.constant 0 : index
    %56 = vector.load %arg4[%c7_27, %c0_28] : memref<20x64xf32, #tpu.memory_space<vmem>>, vector<1x32xf32>
    %c8 = arith.constant 8 : index
    %c0_29 = arith.constant 0 : index
    %57 = vector.load %arg4[%c8, %c0_29] : memref<20x64xf32, #tpu.memory_space<vmem>>, vector<1x32xf32>
    %c9 = arith.constant 9 : index
    %c0_30 = arith.constant 0 : index
    %58 = vector.load %arg4[%c9, %c0_30] : memref<20x64xf32, #tpu.memory_space<vmem>>, vector<1x32xf32>
    %cst_31 = arith.constant dense<0.000000e+00> : vector<8x32xf32>
    %59 = tpu.matmul %8, %43, %cst_31 {dimension_numbers = #tpu.dot_dimension_numbers<[1], [0], [0], [1], [0, 0, 1, 1], [], []>} : vector<8x32xf32>, vector<32x32xf32>, vector<8x32xf32> -> vector<8x32xf32>
    %60 = vector.broadcast %49 : vector<1x32xf32> to vector<8x32xf32>
    %61 = arith.addf %59, %60 : vector<8x32xf32>
    %cst_32 = arith.constant dense<0.000000e+00> : vector<8x32xf32>
    %62 = tpu.matmul %8, %44, %cst_32 {dimension_numbers = #tpu.dot_dimension_numbers<[1], [0], [0], [1], [0, 0, 1, 1], [], []>} : vector<8x32xf32>, vector<32x32xf32>, vector<8x32xf32> -> vector<8x32xf32>
    %63 = vector.broadcast %50 : vector<1x32xf32> to vector<8x32xf32>
    %64 = arith.addf %62, %63 : vector<8x32xf32>
    %cst_33 = arith.constant dense<0.000000e+00> : vector<8x32xf32>
    %65 = tpu.matmul %8, %45, %cst_33 {dimension_numbers = #tpu.dot_dimension_numbers<[1], [0], [0], [1], [0, 0, 1, 1], [], []>} : vector<8x32xf32>, vector<32x32xf32>, vector<8x32xf32> -> vector<8x32xf32>
    %66 = vector.broadcast %51 : vector<1x32xf32> to vector<8x32xf32>
    %67 = arith.addf %65, %66 : vector<8x32xf32>
    %68 = vector.broadcast %35 : vector<1x32xf32> to vector<8x32xf32>
    %69 = arith.mulf %61, %68 : vector<8x32xf32>
    %70 = vector.broadcast %42 : vector<1x32xf32> to vector<8x32xf32>
    %71 = arith.mulf %61, %70 : vector<8x32xf32>
    %72 = tpu.concatenate %69, %71 in 0 : vector<8x32xf32>, vector<8x32xf32> -> vector<16x32xf32>
    %cst_34 = arith.constant dense<0.000000e+00> : vector<16x8xf32>
    %73 = tpu.matmul %72, %64, %cst_34 {dimension_numbers = #tpu.dot_dimension_numbers<[1], [1], [0], [0], [0, 0, 1, 0], [], []>} : vector<16x32xf32>, vector<8x32xf32>, vector<16x8xf32> -> vector<16x8xf32>
    %cst_35 = arith.constant 2.500000e-01 : f32
    %74 = vector.broadcast %cst_35 : f32 to vector<16x8xf32>
    %75 = arith.mulf %73, %74 : vector<16x8xf32>
    %cst_36 = arith.constant -1.000000e+30 : f32
    %76 = vector.broadcast %cst_36 : f32 to vector<16x8xf32>
    %77 = arith.select %27, %75, %76 : vector<16x8xi1>, vector<16x8xf32>
    %cst_37 = arith.constant dense<0xFF800000> : vector<16xf32>
    %78 = vector.multi_reduction <maximumf>, %77, %cst_37 [1] : vector<16x8xf32> to vector<16xf32>
    %79 = vector.shape_cast %78 : vector<16xf32> to vector<16x1xf32>
    %80 = vector.broadcast %79 : vector<16x1xf32> to vector<16x8xf32>
    %81 = arith.subf %77, %80 : vector<16x8xf32>
    %82 = math.exp %81 : vector<16x8xf32>
    %cst_38 = arith.constant dense<0.000000e+00> : vector<16xf32>
    %83 = vector.multi_reduction <add>, %82, %cst_38 [1] : vector<16x8xf32> to vector<16xf32>
    %84 = vector.shape_cast %83 : vector<16xf32> to vector<16x1xf32>
    %85 = tpu.reciprocal %84 {approx = true} : vector<16x1xf32> -> vector<16x1xf32>
    %86 = vector.broadcast %85 : vector<16x1xf32> to vector<16x8xf32>
    %87 = arith.mulf %82, %86 : vector<16x8xf32>
    %cst_39 = arith.constant dense<0.000000e+00> : vector<16x32xf32>
    %88 = tpu.matmul %87, %67, %cst_39 {dimension_numbers = #tpu.dot_dimension_numbers<[1], [0], [0], [1], [0, 0, 1, 1], [], []>} : vector<16x8xf32>, vector<8x32xf32>, vector<16x32xf32> -> vector<16x32xf32>
    %cst_40 = arith.constant 0.000000e+00 : f32
    %89 = vector.broadcast %cst_40 : f32 to vector<8x32xf32>
    %90 = vector.extract_strided_slice %88 {offsets = [0, 0], sizes = [8, 32], strides = [1, 1]} : vector<16x32xf32> to vector<8x32xf32>
    %91 = vector.broadcast %35 : vector<1x32xf32> to vector<8x32xf32>
    %92 = arith.mulf %90, %91 : vector<8x32xf32>
    %93 = arith.addf %89, %92 : vector<8x32xf32>
    %94 = vector.extract_strided_slice %88 {offsets = [8, 0], sizes = [8, 32], strides = [1, 1]} : vector<16x32xf32> to vector<8x32xf32>
    %95 = vector.broadcast %42 : vector<1x32xf32> to vector<8x32xf32>
    %96 = arith.mulf %94, %95 : vector<8x32xf32>
    %97 = arith.addf %93, %96 : vector<8x32xf32>
    %cst_41 = arith.constant dense<0.000000e+00> : vector<8x32xf32>
    %98 = tpu.matmul %97, %46, %cst_41 {dimension_numbers = #tpu.dot_dimension_numbers<[1], [0], [0], [1], [0, 0, 1, 1], [], []>} : vector<8x32xf32>, vector<32x32xf32>, vector<8x32xf32> -> vector<8x32xf32>
    %99 = vector.broadcast %52 : vector<1x32xf32> to vector<8x32xf32>
    %100 = arith.addf %98, %99 : vector<8x32xf32>
    %101 = arith.addf %8, %100 : vector<8x32xf32>
    %cst_42 = arith.constant dense<0.000000e+00> : vector<8xf32>
    %102 = vector.multi_reduction <add>, %101, %cst_42 [1] : vector<8x32xf32> to vector<8xf32>
    %103 = vector.shape_cast %102 : vector<8xf32> to vector<8x1xf32>
    %cst_43 = arith.constant 3.200000e+01 : f32
    %104 = vector.broadcast %cst_43 : f32 to vector<8x1xf32>
    %105 = arith.divf %103, %104 : vector<8x1xf32>
    %106 = vector.broadcast %105 : vector<8x1xf32> to vector<8x32xf32>
    %107 = arith.subf %101, %106 : vector<8x32xf32>
    %108 = arith.mulf %107, %107 : vector<8x32xf32>
    %cst_44 = arith.constant dense<0.000000e+00> : vector<8xf32>
    %109 = vector.multi_reduction <add>, %108, %cst_44 [1] : vector<8x32xf32> to vector<8xf32>
    %110 = vector.shape_cast %109 : vector<8xf32> to vector<8x1xf32>
    %cst_45 = arith.constant 3.200000e+01 : f32
    %111 = vector.broadcast %cst_45 : f32 to vector<8x1xf32>
    %112 = arith.divf %110, %111 : vector<8x1xf32>
    %113 = vector.broadcast %105 : vector<8x1xf32> to vector<8x32xf32>
    %114 = arith.subf %101, %113 : vector<8x32xf32>
    %cst_46 = arith.constant 9.99999974E-6 : f32
    %115 = vector.broadcast %cst_46 : f32 to vector<8x1xf32>
    %116 = arith.addf %112, %115 : vector<8x1xf32>
    %117 = math.rsqrt %116 : vector<8x1xf32>
    %118 = vector.broadcast %117 : vector<8x1xf32> to vector<8x32xf32>
    %119 = arith.mulf %114, %118 : vector<8x32xf32>
    %120 = vector.broadcast %53 : vector<1x32xf32> to vector<8x32xf32>
    %121 = arith.mulf %119, %120 : vector<8x32xf32>
    %122 = vector.broadcast %54 : vector<1x32xf32> to vector<8x32xf32>
    %123 = arith.addf %121, %122 : vector<8x32xf32>
    %cst_47 = arith.constant dense<0.000000e+00> : vector<8x64xf32>
    %124 = tpu.matmul %123, %47, %cst_47 {dimension_numbers = #tpu.dot_dimension_numbers<[1], [0], [0], [1], [0, 0, 1, 1], [], []>} : vector<8x32xf32>, vector<32x64xf32>, vector<8x64xf32> -> vector<8x64xf32>
    %125 = vector.broadcast %55 : vector<1x64xf32> to vector<8x64xf32>
    %126 = arith.addf %124, %125 : vector<8x64xf32>
    %cst_48 = arith.constant 0.000000e+00 : f32
    %127 = vector.broadcast %cst_48 : f32 to vector<8x64xf32>
    %128 = arith.maximumf %126, %127 : vector<8x64xf32>
    %cst_49 = arith.constant dense<0.000000e+00> : vector<8x32xf32>
    %129 = tpu.matmul %128, %48, %cst_49 {dimension_numbers = #tpu.dot_dimension_numbers<[1], [0], [0], [1], [0, 0, 1, 1], [], []>} : vector<8x64xf32>, vector<64x32xf32>, vector<8x32xf32> -> vector<8x32xf32>
    %130 = vector.broadcast %56 : vector<1x32xf32> to vector<8x32xf32>
    %131 = arith.addf %129, %130 : vector<8x32xf32>
    %132 = arith.addf %123, %131 : vector<8x32xf32>
    %cst_50 = arith.constant dense<0.000000e+00> : vector<8xf32>
    %133 = vector.multi_reduction <add>, %132, %cst_50 [1] : vector<8x32xf32> to vector<8xf32>
    %134 = vector.shape_cast %133 : vector<8xf32> to vector<8x1xf32>
    %cst_51 = arith.constant 3.200000e+01 : f32
    %135 = vector.broadcast %cst_51 : f32 to vector<8x1xf32>
    %136 = arith.divf %134, %135 : vector<8x1xf32>
    %137 = vector.broadcast %136 : vector<8x1xf32> to vector<8x32xf32>
    %138 = arith.subf %132, %137 : vector<8x32xf32>
    %139 = arith.mulf %138, %138 : vector<8x32xf32>
    %cst_52 = arith.constant dense<0.000000e+00> : vector<8xf32>
    %140 = vector.multi_reduction <add>, %139, %cst_52 [1] : vector<8x32xf32> to vector<8xf32>
    %141 = vector.shape_cast %140 : vector<8xf32> to vector<8x1xf32>
    %cst_53 = arith.constant 3.200000e+01 : f32
    %142 = vector.broadcast %cst_53 : f32 to vector<8x1xf32>
    %143 = arith.divf %141, %142 : vector<8x1xf32>
    %144 = vector.broadcast %136 : vector<8x1xf32> to vector<8x32xf32>
    %145 = arith.subf %132, %144 : vector<8x32xf32>
    %cst_54 = arith.constant 9.99999974E-6 : f32
    %146 = vector.broadcast %cst_54 : f32 to vector<8x1xf32>
    %147 = arith.addf %143, %146 : vector<8x1xf32>
    %148 = math.rsqrt %147 : vector<8x1xf32>
    %149 = vector.broadcast %148 : vector<8x1xf32> to vector<8x32xf32>
    %150 = arith.mulf %145, %149 : vector<8x32xf32>
    %151 = vector.broadcast %57 : vector<1x32xf32> to vector<8x32xf32>
    %152 = arith.mulf %150, %151 : vector<8x32xf32>
    %153 = vector.broadcast %58 : vector<1x32xf32> to vector<8x32xf32>
    %154 = arith.addf %152, %153 : vector<8x32xf32>
    %155 = arith.index_cast %arg0 : i32 to index
    %156 = memref.load %arg1[%155] : memref<2xi32, #tpu.memory_space<smem>>
    %c15_i32 = arith.constant 15 : i32
    %157 = arith.addi %c15_i32, %156 : i32
    %158 = arith.index_cast %157 : i32 to index
    %c0_55 = arith.constant 0 : index
    %159 = vector.load %arg5[%158, %c0_55] : memref<116x128xf32, #tpu.memory_space<vmem>>, vector<1x128xf32>
    %160 = vector.extract_strided_slice %159 {offsets = [0, 0], sizes = [1, 32], strides = [1, 1]} : vector<1x128xf32> to vector<1x32xf32>
    %161 = vector.broadcast %160 : vector<1x32xf32> to vector<8x32xf32>
    %162 = arith.addf %154, %161 : vector<8x32xf32>
    %c224 = arith.constant 224 : index
    %c0_56 = arith.constant 0 : index
    %163 = vector.load %arg3[%c224, %c0_56] : memref<448x64xf32, #tpu.memory_space<vmem>>, vector<32x32xf32>
    %c256 = arith.constant 256 : index
    %c0_57 = arith.constant 0 : index
    %164 = vector.load %arg3[%c256, %c0_57] : memref<448x64xf32, #tpu.memory_space<vmem>>, vector<32x32xf32>
    %c288 = arith.constant 288 : index
    %c0_58 = arith.constant 0 : index
    %165 = vector.load %arg3[%c288, %c0_58] : memref<448x64xf32, #tpu.memory_space<vmem>>, vector<32x32xf32>
    %c320 = arith.constant 320 : index
    %c0_59 = arith.constant 0 : index
    %166 = vector.load %arg3[%c320, %c0_59] : memref<448x64xf32, #tpu.memory_space<vmem>>, vector<32x32xf32>
    %c352 = arith.constant 352 : index
    %c0_60 = arith.constant 0 : index
    %167 = vector.load %arg3[%c352, %c0_60] : memref<448x64xf32, #tpu.memory_space<vmem>>, vector<32x64xf32>
    %c384 = arith.constant 384 : index
    %c0_61 = arith.constant 0 : index
    %168 = vector.load %arg3[%c384, %c0_61] : memref<448x64xf32, #tpu.memory_space<vmem>>, vector<64x32xf32>
    %c10 = arith.constant 10 : index
    %c0_62 = arith.constant 0 : index
    %169 = vector.load %arg4[%c10, %c0_62] : memref<20x64xf32, #tpu.memory_space<vmem>>, vector<1x32xf32>
    %c11 = arith.constant 11 : index
    %c0_63 = arith.constant 0 : index
    %170 = vector.load %arg4[%c11, %c0_63] : memref<20x64xf32, #tpu.memory_space<vmem>>, vector<1x32xf32>
    %c12 = arith.constant 12 : index
    %c0_64 = arith.constant 0 : index
    %171 = vector.load %arg4[%c12, %c0_64] : memref<20x64xf32, #tpu.memory_space<vmem>>, vector<1x32xf32>
    %c13 = arith.constant 13 : index
    %c0_65 = arith.constant 0 : index
    %172 = vector.load %arg4[%c13, %c0_65] : memref<20x64xf32, #tpu.memory_space<vmem>>, vector<1x32xf32>
    %c14 = arith.constant 14 : index
    %c0_66 = arith.constant 0 : index
    %173 = vector.load %arg4[%c14, %c0_66] : memref<20x64xf32, #tpu.memory_space<vmem>>, vector<1x32xf32>
    %c15 = arith.constant 15 : index
    %c0_67 = arith.constant 0 : index
    %174 = vector.load %arg4[%c15, %c0_67] : memref<20x64xf32, #tpu.memory_space<vmem>>, vector<1x32xf32>
    %c16 = arith.constant 16 : index
    %c0_68 = arith.constant 0 : index
    %175 = vector.load %arg4[%c16, %c0_68] : memref<20x64xf32, #tpu.memory_space<vmem>>, vector<1x64xf32>
    %c17 = arith.constant 17 : index
    %c0_69 = arith.constant 0 : index
    %176 = vector.load %arg4[%c17, %c0_69] : memref<20x64xf32, #tpu.memory_space<vmem>>, vector<1x32xf32>
    %c18 = arith.constant 18 : index
    %c0_70 = arith.constant 0 : index
    %177 = vector.load %arg4[%c18, %c0_70] : memref<20x64xf32, #tpu.memory_space<vmem>>, vector<1x32xf32>
    %c19 = arith.constant 19 : index
    %c0_71 = arith.constant 0 : index
    %178 = vector.load %arg4[%c19, %c0_71] : memref<20x64xf32, #tpu.memory_space<vmem>>, vector<1x32xf32>
    %cst_72 = arith.constant dense<0.000000e+00> : vector<8x32xf32>
    %179 = tpu.matmul %162, %163, %cst_72 {dimension_numbers = #tpu.dot_dimension_numbers<[1], [0], [0], [1], [0, 0, 1, 1], [], []>} : vector<8x32xf32>, vector<32x32xf32>, vector<8x32xf32> -> vector<8x32xf32>
    %180 = vector.broadcast %169 : vector<1x32xf32> to vector<8x32xf32>
    %181 = arith.addf %179, %180 : vector<8x32xf32>
    %cst_73 = arith.constant dense<0.000000e+00> : vector<8x32xf32>
    %182 = tpu.matmul %162, %164, %cst_73 {dimension_numbers = #tpu.dot_dimension_numbers<[1], [0], [0], [1], [0, 0, 1, 1], [], []>} : vector<8x32xf32>, vector<32x32xf32>, vector<8x32xf32> -> vector<8x32xf32>
    %183 = vector.broadcast %170 : vector<1x32xf32> to vector<8x32xf32>
    %184 = arith.addf %182, %183 : vector<8x32xf32>
    %cst_74 = arith.constant dense<0.000000e+00> : vector<8x32xf32>
    %185 = tpu.matmul %162, %165, %cst_74 {dimension_numbers = #tpu.dot_dimension_numbers<[1], [0], [0], [1], [0, 0, 1, 1], [], []>} : vector<8x32xf32>, vector<32x32xf32>, vector<8x32xf32> -> vector<8x32xf32>
    %186 = vector.broadcast %171 : vector<1x32xf32> to vector<8x32xf32>
    %187 = arith.addf %185, %186 : vector<8x32xf32>
    %188 = vector.broadcast %35 : vector<1x32xf32> to vector<8x32xf32>
    %189 = arith.mulf %181, %188 : vector<8x32xf32>
    %190 = vector.broadcast %42 : vector<1x32xf32> to vector<8x32xf32>
    %191 = arith.mulf %181, %190 : vector<8x32xf32>
    %192 = tpu.concatenate %189, %191 in 0 : vector<8x32xf32>, vector<8x32xf32> -> vector<16x32xf32>
    %cst_75 = arith.constant dense<0.000000e+00> : vector<16x8xf32>
    %193 = tpu.matmul %192, %184, %cst_75 {dimension_numbers = #tpu.dot_dimension_numbers<[1], [1], [0], [0], [0, 0, 1, 0], [], []>} : vector<16x32xf32>, vector<8x32xf32>, vector<16x8xf32> -> vector<16x8xf32>
    %cst_76 = arith.constant 2.500000e-01 : f32
    %194 = vector.broadcast %cst_76 : f32 to vector<16x8xf32>
    %195 = arith.mulf %193, %194 : vector<16x8xf32>
    %cst_77 = arith.constant -1.000000e+30 : f32
    %196 = vector.broadcast %cst_77 : f32 to vector<16x8xf32>
    %197 = arith.select %27, %195, %196 : vector<16x8xi1>, vector<16x8xf32>
    %cst_78 = arith.constant dense<0xFF800000> : vector<16xf32>
    %198 = vector.multi_reduction <maximumf>, %197, %cst_78 [1] : vector<16x8xf32> to vector<16xf32>
    %199 = vector.shape_cast %198 : vector<16xf32> to vector<16x1xf32>
    %200 = vector.broadcast %199 : vector<16x1xf32> to vector<16x8xf32>
    %201 = arith.subf %197, %200 : vector<16x8xf32>
    %202 = math.exp %201 : vector<16x8xf32>
    %cst_79 = arith.constant dense<0.000000e+00> : vector<16xf32>
    %203 = vector.multi_reduction <add>, %202, %cst_79 [1] : vector<16x8xf32> to vector<16xf32>
    %204 = vector.shape_cast %203 : vector<16xf32> to vector<16x1xf32>
    %205 = tpu.reciprocal %204 {approx = true} : vector<16x1xf32> -> vector<16x1xf32>
    %206 = vector.broadcast %205 : vector<16x1xf32> to vector<16x8xf32>
    %207 = arith.mulf %202, %206 : vector<16x8xf32>
    %cst_80 = arith.constant dense<0.000000e+00> : vector<16x32xf32>
    %208 = tpu.matmul %207, %187, %cst_80 {dimension_numbers = #tpu.dot_dimension_numbers<[1], [0], [0], [1], [0, 0, 1, 1], [], []>} : vector<16x8xf32>, vector<8x32xf32>, vector<16x32xf32> -> vector<16x32xf32>
    %cst_81 = arith.constant 0.000000e+00 : f32
    %209 = vector.broadcast %cst_81 : f32 to vector<8x32xf32>
    %210 = vector.extract_strided_slice %208 {offsets = [0, 0], sizes = [8, 32], strides = [1, 1]} : vector<16x32xf32> to vector<8x32xf32>
    %211 = vector.broadcast %35 : vector<1x32xf32> to vector<8x32xf32>
    %212 = arith.mulf %210, %211 : vector<8x32xf32>
    %213 = arith.addf %209, %212 : vector<8x32xf32>
    %214 = vector.extract_strided_slice %208 {offsets = [8, 0], sizes = [8, 32], strides = [1, 1]} : vector<16x32xf32> to vector<8x32xf32>
    %215 = vector.broadcast %42 : vector<1x32xf32> to vector<8x32xf32>
    %216 = arith.mulf %214, %215 : vector<8x32xf32>
    %217 = arith.addf %213, %216 : vector<8x32xf32>
    %cst_82 = arith.constant dense<0.000000e+00> : vector<8x32xf32>
    %218 = tpu.matmul %217, %166, %cst_82 {dimension_numbers = #tpu.dot_dimension_numbers<[1], [0], [0], [1], [0, 0, 1, 1], [], []>} : vector<8x32xf32>, vector<32x32xf32>, vector<8x32xf32> -> vector<8x32xf32>
    %219 = vector.broadcast %172 : vector<1x32xf32> to vector<8x32xf32>
    %220 = arith.addf %218, %219 : vector<8x32xf32>
    %221 = arith.addf %162, %220 : vector<8x32xf32>
    %cst_83 = arith.constant dense<0.000000e+00> : vector<8xf32>
    %222 = vector.multi_reduction <add>, %221, %cst_83 [1] : vector<8x32xf32> to vector<8xf32>
    %223 = vector.shape_cast %222 : vector<8xf32> to vector<8x1xf32>
    %cst_84 = arith.constant 3.200000e+01 : f32
    %224 = vector.broadcast %cst_84 : f32 to vector<8x1xf32>
    %225 = arith.divf %223, %224 : vector<8x1xf32>
    %226 = vector.broadcast %225 : vector<8x1xf32> to vector<8x32xf32>
    %227 = arith.subf %221, %226 : vector<8x32xf32>
    %228 = arith.mulf %227, %227 : vector<8x32xf32>
    %cst_85 = arith.constant dense<0.000000e+00> : vector<8xf32>
    %229 = vector.multi_reduction <add>, %228, %cst_85 [1] : vector<8x32xf32> to vector<8xf32>
    %230 = vector.shape_cast %229 : vector<8xf32> to vector<8x1xf32>
    %cst_86 = arith.constant 3.200000e+01 : f32
    %231 = vector.broadcast %cst_86 : f32 to vector<8x1xf32>
    %232 = arith.divf %230, %231 : vector<8x1xf32>
    %233 = vector.broadcast %225 : vector<8x1xf32> to vector<8x32xf32>
    %234 = arith.subf %221, %233 : vector<8x32xf32>
    %cst_87 = arith.constant 9.99999974E-6 : f32
    %235 = vector.broadcast %cst_87 : f32 to vector<8x1xf32>
    %236 = arith.addf %232, %235 : vector<8x1xf32>
    %237 = math.rsqrt %236 : vector<8x1xf32>
    %238 = vector.broadcast %237 : vector<8x1xf32> to vector<8x32xf32>
    %239 = arith.mulf %234, %238 : vector<8x32xf32>
    %240 = vector.broadcast %173 : vector<1x32xf32> to vector<8x32xf32>
    %241 = arith.mulf %239, %240 : vector<8x32xf32>
    %242 = vector.broadcast %174 : vector<1x32xf32> to vector<8x32xf32>
    %243 = arith.addf %241, %242 : vector<8x32xf32>
    %cst_88 = arith.constant dense<0.000000e+00> : vector<8x64xf32>
    %244 = tpu.matmul %243, %167, %cst_88 {dimension_numbers = #tpu.dot_dimension_numbers<[1], [0], [0], [1], [0, 0, 1, 1], [], []>} : vector<8x32xf32>, vector<32x64xf32>, vector<8x64xf32> -> vector<8x64xf32>
    %245 = vector.broadcast %175 : vector<1x64xf32> to vector<8x64xf32>
    %246 = arith.addf %244, %245 : vector<8x64xf32>
    %cst_89 = arith.constant 0.000000e+00 : f32
    %247 = vector.broadcast %cst_89 : f32 to vector<8x64xf32>
    %248 = arith.maximumf %246, %247 : vector<8x64xf32>
    %cst_90 = arith.constant dense<0.000000e+00> : vector<8x32xf32>
    %249 = tpu.matmul %248, %168, %cst_90 {dimension_numbers = #tpu.dot_dimension_numbers<[1], [0], [0], [1], [0, 0, 1, 1], [], []>} : vector<8x64xf32>, vector<64x32xf32>, vector<8x32xf32> -> vector<8x32xf32>
    %250 = vector.broadcast %176 : vector<1x32xf32> to vector<8x32xf32>
    %251 = arith.addf %249, %250 : vector<8x32xf32>
    %252 = arith.addf %243, %251 : vector<8x32xf32>
    %cst_91 = arith.constant dense<0.000000e+00> : vector<8xf32>
    %253 = vector.multi_reduction <add>, %252, %cst_91 [1] : vector<8x32xf32> to vector<8xf32>
    %254 = vector.shape_cast %253 : vector<8xf32> to vector<8x1xf32>
    %cst_92 = arith.constant 3.200000e+01 : f32
    %255 = vector.broadcast %cst_92 : f32 to vector<8x1xf32>
    %256 = arith.divf %254, %255 : vector<8x1xf32>
    %257 = vector.broadcast %256 : vector<8x1xf32> to vector<8x32xf32>
    %258 = arith.subf %252, %257 : vector<8x32xf32>
    %259 = arith.mulf %258, %258 : vector<8x32xf32>
    %cst_93 = arith.constant dense<0.000000e+00> : vector<8xf32>
    %260 = vector.multi_reduction <add>, %259, %cst_93 [1] : vector<8x32xf32> to vector<8xf32>
    %261 = vector.shape_cast %260 : vector<8xf32> to vector<8x1xf32>
    %cst_94 = arith.constant 3.200000e+01 : f32
    %262 = vector.broadcast %cst_94 : f32 to vector<8x1xf32>
    %263 = arith.divf %261, %262 : vector<8x1xf32>
    %264 = vector.broadcast %256 : vector<8x1xf32> to vector<8x32xf32>
    %265 = arith.subf %252, %264 : vector<8x32xf32>
    %cst_95 = arith.constant 9.99999974E-6 : f32
    %266 = vector.broadcast %cst_95 : f32 to vector<8x1xf32>
    %267 = arith.addf %263, %266 : vector<8x1xf32>
    %268 = math.rsqrt %267 : vector<8x1xf32>
    %269 = vector.broadcast %268 : vector<8x1xf32> to vector<8x32xf32>
    %270 = arith.mulf %265, %269 : vector<8x32xf32>
    %271 = vector.broadcast %177 : vector<1x32xf32> to vector<8x32xf32>
    %272 = arith.mulf %270, %271 : vector<8x32xf32>
    %273 = vector.broadcast %178 : vector<1x32xf32> to vector<8x32xf32>
    %274 = arith.addf %272, %273 : vector<8x32xf32>
    %c19_96 = arith.constant 19 : index
    %c0_97 = arith.constant 0 : index
    %275 = vector.load %arg5[%c19_96, %c0_97] : memref<116x128xf32, #tpu.memory_space<vmem>>, vector<32x128xf32>
    %c51 = arith.constant 51 : index
    %c0_98 = arith.constant 0 : index
    %276 = vector.load %arg5[%c51, %c0_98] : memref<116x128xf32, #tpu.memory_space<vmem>>, vector<32x128xf32>
    %c83 = arith.constant 83 : index
    %c0_99 = arith.constant 0 : index
    %277 = vector.load %arg5[%c83, %c0_99] : memref<116x128xf32, #tpu.memory_space<vmem>>, vector<32x128xf32>
    %c115 = arith.constant 115 : index
    %c0_100 = arith.constant 0 : index
    %278 = vector.load %arg5[%c115, %c0_100] : memref<116x128xf32, #tpu.memory_space<vmem>>, vector<1x128xf32>
    %cst_101 = arith.constant dense<0.000000e+00> : vector<8x128xf32>
    %279 = tpu.matmul %154, %275, %cst_101 {dimension_numbers = #tpu.dot_dimension_numbers<[1], [0], [0], [1], [0, 0, 1, 1], [], []>} : vector<8x32xf32>, vector<32x128xf32>, vector<8x128xf32> -> vector<8x128xf32>
    %cst_102 = arith.constant dense<0.000000e+00> : vector<8x128xf32>
    %280 = tpu.matmul %162, %276, %cst_102 {dimension_numbers = #tpu.dot_dimension_numbers<[1], [0], [0], [1], [0, 0, 1, 1], [], []>} : vector<8x32xf32>, vector<32x128xf32>, vector<8x128xf32> -> vector<8x128xf32>
    %281 = arith.addf %279, %280 : vector<8x128xf32>
    %cst_103 = arith.constant dense<0.000000e+00> : vector<8x128xf32>
    %282 = tpu.matmul %274, %277, %cst_103 {dimension_numbers = #tpu.dot_dimension_numbers<[1], [0], [0], [1], [0, 0, 1, 1], [], []>} : vector<8x32xf32>, vector<32x128xf32>, vector<8x128xf32> -> vector<8x128xf32>
    %283 = arith.addf %281, %282 : vector<8x128xf32>
    %284 = vector.broadcast %278 : vector<1x128xf32> to vector<8x128xf32>
    %285 = arith.addf %283, %284 : vector<8x128xf32>
    %286 = tpu.iota {dimensions = array<i32: 1>} : vector<8x128xi32>
    %c8_i32_104 = arith.constant 8 : i32
    %287 = vector.broadcast %c8_i32_104 : i32 to vector<8x128xi32>
    %288 = arith.cmpi eq, %286, %287 : vector<8x128xi32>
    %289 = arith.negf %285 : vector<8x128xf32>
    %290 = math.exp %289 : vector<8x128xf32>
    %cst_105 = arith.constant 1.000000e+00 : f32
    %291 = vector.broadcast %cst_105 : f32 to vector<8x128xf32>
    %292 = arith.addf %291, %290 : vector<8x128xf32>
    %293 = arith.divf %291, %292 : vector<8x128xf32>
    %294 = arith.select %288, %293, %285 : vector<8x128xi1>, vector<8x128xf32>
    %c0_106 = arith.constant 0 : index
    %c0_107 = arith.constant 0 : index
    %c0_108 = arith.constant 0 : index
    %295 = vector.load %arg6[%c0_106, %c0_107, %c0_108] : memref<1x8x128xf32, #tpu.memory_space<vmem>>, vector<1x8x128xf32>
    %296 = vector.shape_cast %295 : vector<1x8x128xf32> to vector<8x128xf32>
    %297 = vector.shape_cast %294 : vector<8x128xf32> to vector<1x8x128xf32>
    tpu.vector_store %arg6[%c0_106, %c0_107, %c0_108], %297 {strides = array<i32>} : memref<1x8x128xf32, #tpu.memory_space<vmem>>, vector<1x8x128xf32>,
    return
  }
  func.func @transform_0(%arg0: i32, %arg1: memref<2xi32, #tpu.memory_space<smem>>) -> (i32, i32, i32) {
    %c0_i32 = arith.constant 0 : i32
    %c0_i32_0 = arith.constant 0 : i32
    %c0_i32_1 = arith.constant 0 : i32
    return %arg0, %c0_i32, %c0_i32_0 : i32, i32, i32
  }
  func.func @transform_1(%arg0: i32, %arg1: memref<2xi32, #tpu.memory_space<smem>>) -> (i32, i32) {
    %c0_i32 = arith.constant 0 : i32
    %c0_i32_0 = arith.constant 0 : i32
    %c0_i32_1 = arith.constant 0 : i32
    return %c0_i32, %c0_i32_0 : i32, i32
  }
  func.func @transform_2(%arg0: i32, %arg1: memref<2xi32, #tpu.memory_space<smem>>) -> (i32, i32) {
    %c0_i32 = arith.constant 0 : i32
    %c0_i32_0 = arith.constant 0 : i32
    %c0_i32_1 = arith.constant 0 : i32
    return %c0_i32, %c0_i32_0 : i32, i32
  }
  func.func @transform_3(%arg0: i32, %arg1: memref<2xi32, #tpu.memory_space<smem>>) -> (i32, i32) {
    %c0_i32 = arith.constant 0 : i32
    %c0_i32_0 = arith.constant 0 : i32
    %c0_i32_1 = arith.constant 0 : i32
    return %c0_i32, %c0_i32_0 : i32, i32
  }
  func.func @transform_4(%arg0: i32, %arg1: memref<2xi32, #tpu.memory_space<smem>>) -> (i32, i32, i32) {
    %c0_i32 = arith.constant 0 : i32
    %c0_i32_0 = arith.constant 0 : i32
    %c0_i32_1 = arith.constant 0 : i32
    return %arg0, %c0_i32, %c0_i32_0 : i32, i32, i32
  }
}

</mosaic_0001>

<bundles_post_ra>
// kernel: hierarchical_forward.1
= control target key start
LH: loop header
LB: loop body
LE: loop exit
PB: predicated region body
PF: predicated region fallthrough
CT: control target
= control target key end

     0   :  { %s3160_s0 = inlined_call_operand.vmem [shape: s32[2], index: 0, kind: input, shape index: {}]   ;;  %s3161_s1 = inlined_call_operand.vmem [shape: f32[2,8,6], index: 1, kind: input, shape index: {}]   ;;  %s3162_s2 = inlined_call_operand.vmem [shape: f32[448,64], index: 2, kind: input, shape index: {}]   ;;  %s3163_s3 = inlined_call_operand.vmem [shape: f32[20,64], index: 3, kind: input, shape index: {}]   ;;  %s3164_s4 = inlined_call_operand.vmem [shape: f32[116,128], index: 4, kind: input, shape index: {}]   ;;  %s3165_s5 = inlined_call_operand.vmem [shape: f32[2,8,128], index: 5, kind: output, shape index: {}]  }
   0x1   :  { %s10_s20 = sshll.u32 %s3160_s0, 4  ;;  %s11_s20 = int_to_ptr.vmem [resolvable:$true] %s10_s20 }
   0x2   :  { %s2628_s21 = scalar_lea.vmem %s11_s20, 16  ;;  %p2633_p1 = scmp.lt.s32.totalorder %s11_s20, %s11_s20 }
   0x3   :  { %p2629_p0 = scmp.ne.s32.totalorder %s11_s20, %s2628_s21  ;;  %p2634_p2 = scmp.lt.s32.totalorder %s2628_s21, %s2628_s21 }
   0x5   :  { %p2635_p3 = por %p2634_p2, %p2633_p1 }
   0x7   :  { %p2636_p4 = pnand %p2635_p3, %p2629_p0 }
   0x9   :  { %2639 = shalt.err (!%p2636_p4)  }
   0xa   :  { %s2650_s22 = smov [#allocation3]  }
   0xb   :  { %13 = dma.vmem_to_smem %s11_s20, 16, %s2650_s22, [#allocation2] }
   0xc   :  { %2644 = dma.done.wait [#allocation2], 16 }
   0xd   :  { %2645 = vsyncadd [#allocation2], 4294967280 }
   0xe   :  { %15 = sfence }
   0xf   :  { %s2687_s23 = smov 0  }
  0x10 LB: > { %s2693_s0 = sadd.s32 4294967295, %s2648_s23   ;;  %p2124_p5 = scmp.ge.s32.totalorder %s2648_s23, 1  ;;  %s2648_s23 = sphi %s2687_s23, %s21_s23  }
  0x11   : > { %p168_p6 = scmp.lt.s32.totalorder %s2648_s23, 3 }
  0x13   : > { %p169_p7 = pnand %p2124_p5, %p168_p6 }
  0x14   : > { %v201_v0 = vld [vmem:[%s3164_s4] sm:$0x3f] (!%p169_p7)  ;;  %vm212_vm0 = vcmask (!%p169_p7), 1045504   ;;  %p192_p8 = scmp.lt.s32.totalorder (!%p169_p7), %s2693_s0, 1  ;;  %v2651_v1 = vmov (!%p169_p7), 0.0   ;;  %vm2652_vm1 = vmmov (!%p169_p7), 0   ;;  %v287_v28 = vlaneseq (!%p169_p7) }
  0x15   : > { %172 = sbr.rel (%p169_p7) target bundleno = 4986 (0x137a), region = 36  ;;  %2280 = vmatprep.subr.mxu0 (!%p169_p7), %v2651_v1  ;;  %2282 = vmatprep.mubr.msk.f32.mxu0 (!%p169_p7), %vm2652_vm1, %v2651_v1  ;;  %v328_v2 = vld [vmem:[%s3162_s2] sm:$0xff] (!%p169_p7)  ;;  %v329_v3 = vld [vmem:[%s3162_s2 + $0x8] sm:$0xff] (!%p169_p7)  ;;  %v2653_v5 = vmov (!%p169_p7), 0.0|0.0   ;;  %vm208_vm2 = vcmask (!%p169_p7), 48128   ;;  %v330_v10 = vld [vmem:[%s3162_s2 + $0x10] sm:$0xff] (!%p169_p7) }
  0x16   : > { %v332_v4 = vld [vmem:[%s3162_s2 + $0x20] sm:$0xff] (!%p169_p7)  ;;  %2281 = vmatpush3.msk.msra.mxu0 (!%p169_p7), %vm212_vm0, %v201_v0  ;;  %2486 = vmatprep.subr.bf16.mxu1 (!%p169_p7), %v2653_v5  ;;  %v2487_v6 = vpack.c.bf16 (!%p169_p7), %v329_v3, %v328_v2  ;;  %v333_v7 = vld [vmem:[%s3162_s2 + $0x28] sm:$0xff] (!%p169_p7)  ;;  %v331_v11 = vld [vmem:[%s3162_s2 + $0x18] sm:$0xff] (!%p169_p7)  ;;  %vm370_vm3 = vcmask (!%p169_p7), 261120   ;;  %v2778_v29 = vand.u32 (!%p169_p7), 127, %v287_v28  ;;  %v288_v46 = vshrl.u32 (!%p169_p7), %v287_v28, 7 }
  0x17   : > { %2492 = vmatprep.subr.bf16.mxu0 (!%p169_p7), %v2653_v5  ;;  %2293 = vmatprep.mubr.msk.f32.mxu1 (!%p169_p7), %vm2652_vm1, %v2651_v1  ;;  %v2493_v8 = vpack.c.bf16 (!%p169_p7), %v333_v7, %v332_v4  ;;  %v2490_v12 = vpack.c.bf16 (!%p169_p7), %v331_v11, %v330_v10  ;;  %v334_v13 = vld [vmem:[%s3162_s2 + $0x30] sm:$0xff] (!%p169_p7)  ;;  %v335_v14 = vld [vmem:[%s3162_s2 + $0x38] sm:$0xff] (!%p169_p7)  ;;  %v2127_v16 = vld [vmem:[%s3164_s4 + $0x6] ss:$0 sm:$0xff] (!%p169_p7)  ;;  %vm682_vm9 = vcmask (!%p169_p7), 64512   ;;  %vm974_vm11 = vcmask (!%p169_p7), 523264  }
  0x18   : > { %2488 = vmatpush3.bf16.msra.mxu1 (!%p169_p7), %v2487_v6  ;;  %v2496_v15 = vpack.c.bf16 (!%p169_p7), %v335_v14, %v334_v13  ;;  %v336_v17 = vld [vmem:[%s3162_s2 + $0x40] sm:$0xff] (!%p169_p7)  ;;  %v337_v18 = vld [vmem:[%s3162_s2 + $0x48] sm:$0xff] (!%p169_p7)  ;;  %v338_v25 = vld [vmem:[%s3162_s2 + $0x50] sm:$0xff] (!%p169_p7)  ;;  %vm323_vm4 = vcmp.ge.s32.totalorder (!%p169_p7), %v2778_v29, 16  ;;  %vm324_vm5 = vcmp.lt.s32.totalorder (!%p169_p7), %v2778_v29, 32  ;;  %vm319_vm6 = vcmp.lt.s32.totalorder (!%p169_p7), %v2778_v29, 16 }
  0x19   : > { %2489 = vmatprep.subr.bf16.mxu1 (!%p169_p7), %v2653_v5  ;;  %v203_v19 = vld [vmem:[%s3164_s4 + $0x7] sm:$0xff] (!%p169_p7)  ;;  %v2499_v23 = vpack.c.bf16 (!%p169_p7), %v337_v18, %v336_v17  ;;  %v339_v26 = vld [vmem:[%s3162_s2 + $0x58] sm:$0xff] (!%p169_p7)  ;;  %v2132_v30 = vld [vmem:[%s3163_s3] ss:$0 sm:$0xff] (!%p169_p7)  ;;  %v2790_v32 = vsel (!%p169_p7), %vm319_vm6, 1.0, %v2651_v1  ;;  %v289_v47 = vadd.s32 (!%p169_p7), 8, %v288_v46 }
  0x1a   : > { %v2502_v27 = vpack.c.bf16 (!%p169_p7), %v339_v26, %v338_v25  ;;  %v2134_v31 = vld [vmem:[%s3163_s3 + $0x1] ss:$0 sm:$0xff] (!%p169_p7)  ;;  %vm325_vm7 = vmand (!%p169_p7), %vm323_vm4, %vm324_vm5  ;;  %v2136_v42 = vld [vmem:[%s3163_s3 + $0x2] ss:$0 sm:$0xff] (!%p169_p7)  ;;  %v294_v48 = vand.u32 (!%p169_p7), 7, %v288_v46  ;;  %s1072_s9 = sld [smem:[#allocation3 + %s2693_s0]] (!%p169_p7) }
  0x1b   : > { %v2793_v39 = vsel (!%p169_p7), %vm325_vm7, 1.0, %v2651_v1  ;;  %v301_v49 = vand.u32 (!%p169_p7), 7, %v289_v47  ;;  %v342_v17 = vld [vmem:[%s3162_s2 + $0x70] sm:$0xff] (!%p169_p7)  ;;  %v343_v18 = vld [vmem:[%s3162_s2 + $0x78] sm:$0xff] (!%p169_p7)  ;;  %v2143_v26 = vld [vmem:[%s3163_s3 + $0x3] ss:$0 sm:$0xff] (!%p169_p7) }
  0x1c   : > { %s2714_s7 = scalar_select %p192_p8, %s2693_s0, 1  ;;  %2491 = vmatpush3.bf16.msra.mxu1 %v2490_v12  ;;  %vm2806_vm8 = vcmp.le.s32.totalorder %v2778_v29, %v294_v48  ;;  %v349_v46 = vld [vmem:[%s3162_s2 + $0xa8] sm:$0xff]  ;;  %v350_v47 = vld [vmem:[%s3162_s2 + $0xb0] sm:$0xff]  ;;  %vm2056_vm12 = vcmp.eq.s32.totalorder %v2778_v29, 8 }
  0x1d   : > { %2498 = vmatprep.subr.bf16.mxu1 %v2653_v5  ;;  %vm2811_vm10 = vcmp.le.s32.totalorder %v2778_v29, %v301_v49  ;;  %v351_v49 = vld [vmem:[%s3162_s2 + $0xb8] sm:$0xff] }
  0x1e   : > { %s2125_s10 = sshll.u32 %s2714_s7, 3 }
  0x1f   : > { %s195_s13 = scalar_lea.vmem %s3161_s1, %s2125_s10  ;;  %s199_s14 = scalar_lea.vmem %s3165_s5, %s2125_s10 }
  0x20   : > { %v200_v9 = vld [vmem:[%s195_s13] sm:$0xff]  ;;  %s2094_s15 = scalar_lea.vmem %s3164_s4, %s1072_s9 }
  0x21   : > { %2283 = vmatmul.mubr.msk.f32.vlgmr.msra.gmra.mrb[0].mxu0 %vm208_vm2, %v200_v9  ;;  %v341_v9 = vld [vmem:[%s3162_s2 + $0x68] sm:$0xff] }
  0x22   : > { %2494 = vmatpush3.bf16.msra.mxu0 %v2493_v8  ;;  %2304 = vmatprep.mubr.msk.f32.mxu0 %vm2652_vm1, %v2651_v1  ;;  %v340_v8 = vld [vmem:[%s3162_s2 + $0x60] sm:$0xff] }
  0x23   : > { %2495 = vmatprep.subr.bf16.mxu0 %v2653_v5  ;;  %v2505_v10 = vpack.c.bf16 %v341_v9, %v340_v8 }
  0x26   : > { %2497 = vmatpush3.bf16.msra.mxu0 %v2496_v15 }
  0xf4   : > { %v282_v20 = vpop.f32.mrb[0].mxu0 }
  0xf5   : > { %v283_v21 = vadd.f32 %v2127_v16, %v282_v20  ;;  %v2284_v22 = vpop.f32.mrb[1].mxu0 }
  0xf7   : > { %v2758_v24 = vadd.f32 %v283_v21, %v203_v19  ;;  %v2508_v19 = vpack.c.bf16 %v343_v18, %v342_v17 }
  0xf9   : > { %2294 = vmatmul.mubr.msk.f32.vlgmr.msra.gmra.mrb[0].mxu1 %vm370_vm3, %v2758_v24  ;;  %2305 = vmatmul.mubr.msk.f32.vlgmr.msra.gmra.mrb[2].mxu0 %vm370_vm3, %v2758_v24 }
  0xfa   : > { %2500 = vmatpush3.bf16.msra.mxu1 %v2499_v23  ;;  %2315 = vmatprep.mubr.msk.f32.mxu1 %vm2652_vm1, %v2651_v1 }
  0xfb   : > { %2501 = vmatprep.subr.bf16.mxu1 %v2653_v5 }
  0xfe   : > { %2503 = vmatpush3.bf16.msra.mxu1 %v2502_v27 }
  0xff   : > { %2504 = vmatprep.subr.bf16.mxu1 %v2653_v5 }
 0x101   : > { %2316 = vmatmul.mubr.msk.f32.vlgmr.msra.gmra.mrb[2].mxu1 %vm370_vm3, %v2758_v24 }
 0x102   : > { %2336 = vmatprep.mubr.msk.f32.mxu1 %vm2652_vm1, %v2651_v1  ;;  %2506 = vmatpush3.bf16.msra.mxu1 %v2505_v10 }
 0x103   : > { %2507 = vmatprep.subr.bf16.mxu1 %v2653_v5 }
 0x106   : > { %2509 = vmatpush3.bf16.msra.mxu1 %v2508_v19 }
 0x107   : > { %2516 = vmatprep.subr.bf16.mxu1 %v2653_v5 }
 0x1cc   : > { %v440_v33 = vpop.f32.mrb[0].mxu1  ;;  %v514_v34 = vpop.f32.mrb[2].mxu0 }
 0x1cd   : > { %v441_v35 = vadd.f32 %v2132_v30, %v440_v33  ;;  %v515_v36 = vadd.f32 %v2134_v31, %v514_v34  ;;  %v2295_v37 = vpop.f32.mrb[1].mxu1  ;;  %v2306_v38 = vpop.f32.mrb[3].mxu0 }
 0x1cf   : > { %v592_v40 = vmul.f32 %v2790_v32, %v441_v35  ;;  %2318 = vmatprep.subr.msk.mxu0 %vm370_vm3, %v515_v36  ;;  %v593_v41 = vmul.f32 %v2793_v39, %v441_v35 }
 0x1d0   : > { %2319 = vmatpush3.xpose.msk.msra.mxu0 %vm370_vm3, %v515_v36 }
 0x1d1   : > { %2320 = vmatprep.mubr.msk.f32.mxu0 %vm370_vm3, %v592_v40  ;;  %v344_v40 = vld [vmem:[%s3162_s2 + $0x80] sm:$0xff] }
 0x1d3   : > { %2321 = vmatmul.mubr.msk.f32.vlgmr.msra.gmra.mrb[4].mxu0 %vm370_vm3, %v593_v41  ;;  %v345_v41 = vld [vmem:[%s3162_s2 + $0x88] sm:$0xff] }
 0x1d4   : > { %v588_v43 = vpop.f32.mrb[2].mxu1 }
 0x1d5   : > { %v589_v44 = vadd.f32 %v2136_v42, %v588_v43  ;;  %v2317_v45 = vpop.f32.mrb[3].mxu1  ;;  %v2511_v42 = vpack.c.bf16 %v345_v41, %v344_v40  ;;  %v347_v43 = vld [vmem:[%s3162_s2 + $0x98] sm:$0xff] }
 0x1d6   : > { %v348_v45 = vld [vmem:[%s3162_s2 + $0xa0] sm:$0xff] }
 0x1d7   : > { %2323 = vmatprep.subr.mxu0 %v589_v44  ;;  %v2517_v48 = vpack.c.bf16 %v349_v46, %v348_v45  ;;  %v1085_v45 = vld [vmem:[%s3162_s2 + $0x100] sm:$0xff]  ;;  %v1086_v46 = vld [vmem:[%s3162_s2 + $0x108] sm:$0xff] }
 0x1d8   : > { %2324 = vmatpush3.msra.mxu0 %v589_v44 }
 0x1d9   : > { %2510 = vmatprep.subr.bf16.mxu0 %v2653_v5 }
 0x2a6   : > { %v2322_v50 = vpop.f32.mrb[4].mxu0 }
 0x2a7   : > { %v669_v51 = vpop.f32.mrb[5].mxu0  ;;  %v679_v53 = vmul.f32 0.25, %v2322_v50  ;;  %v2520_v50 = vpack.c.bf16 %v351_v49, %v350_v47  ;;  %v2154_v47 = vld [vmem:[%s2094_s15 + $0xf] ss:$0 sm:$0xff]  ;;  %v2535_v49 = vpack.c.bf16 %v1086_v46, %v1085_v45 }
 0x2a8   : > { %v678_v54 = vmul.f32 0.25, %v669_v51  ;;  %v352_v51 = vld [vmem:[%s3162_s2 + $0xc0] sm:$0xff] }
 0x2a9   : > { %v681_v58 = vsel %vm2811_vm10, %v679_v53, -1e+30  ;;  %v353_v53 = vld [vmem:[%s3162_s2 + $0xc8] sm:$0xff] }
 0x2aa   : > { %v680_v56 = vsel %vm2806_vm8, %v678_v54, -1e+30  ;;  %v686_v59 = vsel %vm682_vm9, %v681_v58, -inf  ;;  %v2523_v54 = vpack.c.bf16 %v353_v53, %v352_v51  ;;  %v1087_v51 = vld [vmem:[%s3162_s2 + $0x110] sm:$0xff]  ;;  %v1088_v53 = vld [vmem:[%s3162_s2 + $0x118] sm:$0xff] }
 0x2ab   : > { %v683_v57 = vsel %vm682_vm9, %v680_v56, -inf }
 0x2ac   : > { %684 = vmax.xlane.f32.xlu0 %v683_v57 }
 0x2b0   : > { %687 = vmax.xlane.f32.xlu0 %v686_v59 }
 0x339   : > { %v685_v60 = vpop.xlane.xlu0 %684 }
 0x33a   : > { %v689_v61 = vsub.f32 %v680_v56, %v685_v60  ;;  %v2145_v60 = vld [vmem:[%s3163_s3 + $0x4] ss:$0 sm:$0xff] }
 0x33c   : > { %v691_v62 = vmul.f32 1.442695, %v689_v61 }
 0x33d   : > { %v688_v63 = vpop.xlane.xlu0 %687 }
 0x33e   : > { %2600 = vpow2.f32 %v691_v62  ;;  %v690_v0 = vsub.f32 %v681_v58, %v688_v63  ;;  %v2146_v62 = vld [vmem:[%s3163_s3 + $0x5] ss:$0 sm:$0xff] }
 0x340   : > { %v693_v2 = vmul.f32 1.442695, %v690_v0 }
 0x342   : > { %2602 = vpow2.f32 %v693_v2  ;;  %v354_v2 = vld [vmem:[%s3162_s2 + $0xd0] sm:$0xff] }
 0x348   : > { %v2601_v3 = vpop.eup %2600 }
 0x349   : > { %v695_v4 = vsel %vm682_vm9, %v2601_v3, 0.0 }
 0x34a   : > { %696 = vadd.xlane.f32.xlu1 %v695_v4 }
 0x34c   : > { %v2603_v6 = vpop.eup %2602 }
 0x34d   : > { %v698_v7 = vsel %vm682_vm9, %v2603_v6, 0.0 }
 0x34e   : > { %699 = vadd.xlane.f32.xlu1 %v698_v7 }
 0x3d7   : > { %v697_v11 = vpop.xlane.xlu1 %696 }
 0x3d8   : > { %2604 = vrcp.f32 %v697_v11  ;;  %v2149_v11 = vld [vmem:[%s3163_s3 + $0x7] ss:$0 sm:$0xff] }
 0x3db   : > { %v700_v12 = vpop.xlane.xlu1 %699 }
 0x3dc   : > { %2606 = vrcp.f32 %v700_v12 }
 0x3e2   : > { %v2605_v13 = vpop.eup %2604 }
 0x3e3   : > { %v703_v14 = vmul.f32 %v2605_v13, %v2601_v3  ;;  %v355_v3 = vld [vmem:[%s3162_s2 + $0xd8] sm:$0xff] }
 0x3e4   : > { %v2526_v4 = vpack.c.bf16 %v355_v3, %v354_v2 }
 0x3e5   : > { %2325 = vmatprep.mubr.msk.f32.mxu0 %vm682_vm9, %v703_v14 }
 0x3e6   : > { %v2607_v15 = vpop.eup %2606 }
 0x3e7   : > { %v704_v16 = vmul.f32 %v2607_v15, %v2603_v6  ;;  %v2147_v6 = vld [vmem:[%s3163_s3 + $0x6] ss:$0 sm:$0xff] }
 0x3e9   : > { %2326 = vmatmul.mubr.msk.f32.vlgmr.msra.gmra.mrb[6].mxu0 %vm682_vm9, %v704_v16 }
 0x3ea   : > { %2347 = vmatprep.mubr.msk.f32.mxu0 %vm2652_vm1, %v2651_v1  ;;  %2512 = vmatpush3.bf16.msra.mxu0 %v2511_v42  ;;  %v2151_v42 = vld [vmem:[%s3163_s3 + $0x8] ss:$0 sm:$0xff] }
 0x3eb   : > { %2513 = vmatprep.subr.bf16.mxu0 %v2653_v5 }
 0x4bc   : > { %v2327_v20 = vpop.f32.mrb[6].mxu0 }
 0x4bd   : > { %v788_v21 = vmul.f32 %v2327_v20, %v2793_v39  ;;  %v777_v22 = vpop.f32.mrb[7].mxu0 }
 0x4be   : > { %v786_v23 = vmul.f32 %v2790_v32, %v777_v22  ;;  %v1081_v22 = vld [vmem:[%s3162_s2 + $0xe0] sm:$0xff] }
 0x4c0   : > { %v789_v25 = vadd.f32 %v788_v21, %v786_v23  ;;  %v1082_v23 = vld [vmem:[%s3162_s2 + $0xe8] sm:$0xff] }
 0x4c2   : > { %2337 = vmatmul.mubr.msk.f32.vlgmr.msra.gmra.mrb[4].mxu1 %vm370_vm3, %v789_v25  ;;  %v2529_v25 = vpack.c.bf16 %v1082_v23, %v1081_v22 }
 0x4c3   : > { %2366 = vmatprep.mubr.msk.f32.mxu1 %vm2652_vm1, %v2651_v1  ;;  %2518 = vmatpush3.bf16.msra.mxu1 %v2517_v48 }
 0x4c4   : > { %2519 = vmatprep.subr.bf16.mxu1 %v2653_v5 }
 0x4c7   : > { %2521 = vmatpush3.bf16.msra.mxu1 %v2520_v50 }
 0x4c8   : > { %2522 = vmatprep.subr.bf16.mxu1 %v2653_v5 }
 0x4cb   : > { %2524 = vmatpush3.bf16.msra.mxu1 %v2523_v54  ;;  %v2538_v54 = vpack.c.bf16 %v1088_v53, %v1087_v51 }
 0x4cc   : > { %2525 = vmatprep.subr.bf16.mxu1 %v2653_v5 }
 0x4cf   : > { %2527 = vmatpush3.bf16.msra.mxu1 %v2526_v4 }
 0x4d0   : > { %2540 = vmatprep.subr.bf16.mxu1 %v2653_v5 }
 0x595   : > { %v863_v27 = vpop.f32.mrb[4].mxu1 }
 0x596   : > { %v864_v28 = vadd.f32 %v2143_v26, %v863_v27  ;;  %v2338_v30 = vpop.f32.mrb[5].mxu1  ;;  %v1089_v26 = vld [vmem:[%s3162_s2 + $0x120] sm:$0xff]  ;;  %v1090_v27 = vld [vmem:[%s3162_s2 + $0x128] sm:$0xff] }
 0x597   : > { %v1083_v30 = vld [vmem:[%s3162_s2 + $0xf0] sm:$0xff] }
 0x598   : > { %v867_v31 = vadd.f32 %v864_v28, %v2758_v24  ;;  %v346_v24 = vld [vmem:[%s3162_s2 + $0x90] sm:$0xff]  ;;  %v2541_v28 = vpack.c.bf16 %v1090_v27, %v1089_v26  ;;  %v1094_v26 = vld [vmem:[%s3162_s2 + $0x148] sm:$0xff] }
 0x599   : > { %v2514_v44 = vpack.c.bf16 %v347_v43, %v346_v24  ;;  %v2152_v43 = vld [vmem:[%s3163_s3 + $0x9] ss:$0 sm:$0xff] }
 0x59a   : > { %v868_v33 = vsel %vm370_vm3, %v867_v31, 0.0 }
 0x59b   : > { %869 = vadd.xlane.f32.xlu0 %v868_v33  ;;  %2515 = vmatpush3.bf16.msra.mxu0 %v2514_v44  ;;  %v1091_v33 = vld [vmem:[%s3162_s2 + $0x130] sm:$0xff] }
 0x59c   : > { %2528 = vmatprep.subr.bf16.mxu0 %v2653_v5 }
 0x628   : > { %v870_v34 = vpop.xlane.xlu0 %869 }
 0x629   : > { %v872_v35 = vmul.f32 0.03125, %v870_v34 }
 0x62b   : > { %v873_v36 = vsub.f32 %v867_v31, %v872_v35  ;;  %v1084_v31 = vld [vmem:[%s3162_s2 + $0xf8] sm:$0xff] }
 0x62c   : > { %v2532_v34 = vpack.c.bf16 %v1084_v31, %v1083_v30  ;;  %v1092_v35 = vld [vmem:[%s3162_s2 + $0x138] sm:$0xff] }
 0x62d   : > { %v874_v37 = vmul.f32 %v873_v36, %v873_v36 }
 0x62f   : > { %v875_v38 = vsel %vm370_vm3, %v874_v37, 0.0 }
 0x630   : > { %876 = vadd.xlane.f32.xlu1 %v875_v38 }
 0x6bd   : > { %v877_v56 = vpop.xlane.xlu1 %876 }
 0x6be   : > { %v878_v57 = vmul.f32 0.03125, %v877_v56  ;;  %v2155_v56 = vld [vmem:[%s3163_s3 + $0xa] ss:$0 sm:$0xff] }
 0x6c0   : > { %v879_v58 = vadd.f32 1e-05, %v878_v57 }
 0x6c2   : > { %2608 = vrsqrt.f32 %v879_v58 }
 0x6cc   : > { %v2609_v59 = vpop.eup %2608 }
 0x6cd   : > { %v881_v61 = vmul.f32 %v2609_v59, %v873_v36  ;;  %v2544_v36 = vpack.c.bf16 %v1092_v35, %v1091_v33 }
 0x6cf   : > { %v886_v63 = vmul.f32 %v2145_v60, %v881_v61 }
 0x6d1   : > { %v891_v0 = vadd.f32 %v2146_v62, %v886_v63  ;;  %v2157_v63 = vld [vmem:[%s3163_s3 + $0xb] ss:$0 sm:$0xff] }
 0x6d3   : > { %2348 = vmatmul.mubr.msk.f32.vlgmr.msra.gmra.mrb[8].mxu0 %vm370_vm3, %v891_v0 }
 0x6d4   : > { %2377 = vmatprep.mubr.msk.f32.mxu0 %vm2652_vm1, %v2651_v1  ;;  %2530 = vmatpush3.bf16.msra.mxu0 %v2529_v25  ;;  %v1093_v25 = vld [vmem:[%s3162_s2 + $0x140] sm:$0xff] }
 0x6d5   : > { %2531 = vmatprep.subr.bf16.mxu0 %v2653_v5  ;;  %v2547_v27 = vpack.c.bf16 %v1094_v26, %v1093_v25  ;;  %v1822_v25 = vld [vmem:[%s3164_s4 + $0x1b] sm:$0xff] }
 0x6d8   : > { %2533 = vmatpush3.bf16.msra.mxu0 %v2532_v34 }
 0x6d9   : > { %2534 = vmatprep.subr.bf16.mxu0 %v2653_v5 }
 0x7a6   : > { %v965_v7 = vpop.f32.mrb[8].mxu0 }
 0x7a7   : > { %v966_v8 = vadd.f32 %v2147_v6, %v965_v7  ;;  %v2349_v9 = vpop.f32.mrb[9].mxu0 }
 0x7a9   : > { %v969_v10 = vmax.f32 %v966_v8, 0.0 }
 0x7ab   : > { %2367 = vmatmul.mubr.msk.f32.vlgmr.msra.gmra.mrb[6].mxu1 %vm974_vm11, %v969_v10 }
 0x7ac   : > { %2399 = vmatprep.mubr.msk.f32.mxu1 %vm2652_vm1, %v2651_v1  ;;  %2542 = vmatpush3.bf16.msra.mxu1 %v2541_v28 }
 0x7ad   : > { %2543 = vmatprep.subr.bf16.mxu1 %v2653_v5 }
 0x7b0   : > { %2545 = vmatpush3.bf16.msra.mxu1 %v2544_v36  ;;  %v1095_v36 = vld [vmem:[%s3162_s2 + $0x150] sm:$0xff] }
 0x7b1   : > { %2546 = vmatprep.subr.bf16.mxu1 %v2653_v5 }
 0x87e   : > { %v1044_v12 = vpop.f32.mrb[6].mxu1 }
 0x87f   : > { %v1045_v13 = vadd.f32 %v2149_v11, %v1044_v12  ;;  %v2368_v14 = vpop.f32.mrb[7].mxu1 }
 0x881   : > { %v1048_v15 = vadd.f32 %v1045_v13, %v891_v0  ;;  %v2159_v0 = vld [vmem:[%s3163_s3 + $0xc] ss:$0 sm:$0xff] }
 0x883   : > { %v1049_v16 = vsel %vm370_vm3, %v1048_v15, 0.0 }
 0x884   : > { %1050 = vadd.xlane.f32.xlu0 %v1049_v16 }
 0x911   : > { %v1051_v17 = vpop.xlane.xlu0 %1050 }
 0x912   : > { %v1052_v18 = vmul.f32 0.03125, %v1051_v17 }
 0x914   : > { %v1053_v19 = vsub.f32 %v1048_v15, %v1052_v18 }
 0x916   : > { %v1054_v20 = vmul.f32 %v1053_v19, %v1053_v19 }
 0x918   : > { %v1055_v21 = vsel %vm370_vm3, %v1054_v20, 0.0 }
 0x919   : > { %1056 = vadd.xlane.f32.xlu1 %v1055_v21 }
 0x9a6   : > { %v1057_v37 = vpop.xlane.xlu1 %1056 }
 0x9a7   : > { %v1058_v38 = vmul.f32 0.03125, %v1057_v37  ;;  %v1096_v37 = vld [vmem:[%s3162_s2 + $0x158] sm:$0xff] }
 0x9a9   : > { %v1059_v40 = vadd.f32 1e-05, %v1058_v38  ;;  %v2550_v38 = vpack.c.bf16 %v1096_v37, %v1095_v36 }
 0x9ab   : > { %2610 = vrsqrt.f32 %v1059_v40 }
 0x9b5   : > { %v2611_v41 = vpop.eup %2610 }
 0x9b6   : > { %v1061_v24 = vmul.f32 %v2611_v41, %v1053_v19 }
 0x9b8   : > { %v1066_v44 = vmul.f32 %v2151_v42, %v1061_v24 }
 0x9ba   : > { %v2958_v48 = vadd.f32 %v2152_v43, %v1066_v44  ;;  %v2166_v44 = vld [vmem:[%s3163_s3 + $0xd] ss:$0 sm:$0xff] }
 0x9bc   : > { %v2961_v50 = vadd.f32 %v2154_v47, %v2958_v48 }
 0x9be   : > { %2378 = vmatmul.mubr.msk.f32.vlgmr.msra.gmra.mrb[10].mxu0 %vm370_vm3, %v2961_v50  ;;  %2400 = vmatmul.mubr.msk.f32.vlgmr.msra.gmra.mrb[8].mxu1 %vm370_vm3, %v2961_v50 }
 0x9bf   : > { %2536 = vmatpush3.bf16.msra.mxu0 %v2535_v49  ;;  %2388 = vmatprep.mubr.msk.f32.mxu0 %vm2652_vm1, %v2651_v1 }
 0x9c0   : > { %2537 = vmatprep.subr.bf16.mxu0 %v2653_v5  ;;  %2420 = vmatprep.mubr.msk.f32.mxu1 %vm2652_vm1, %v2651_v1 }
 0x9c1   : > { %2548 = vmatpush3.bf16.msra.mxu1 %v2547_v27  ;;  %v1823_v27 = vld [vmem:[%s3164_s4 + $0x23] sm:$0xff] }
 0x9c2   : > { %2549 = vmatprep.subr.bf16.mxu1 %v2653_v5 }
 0x9c3   : > { %2539 = vmatpush3.bf16.msra.mxu0 %v2538_v54 }
 0x9c5   : > { %2551 = vmatpush3.bf16.msra.mxu1 %v2550_v38 }
 0x9c6   : > { %2389 = vmatmul.mubr.msk.f32.vlgmr.msra.gmra.mrb[12].mxu0 %vm370_vm3, %v2961_v50  ;;  %2558 = vmatprep.subr.bf16.mxu1 %v2653_v5 }
 0xa91   : > { %v1192_v57 = vpop.f32.mrb[10].mxu0  ;;  %v1340_v58 = vpop.f32.mrb[8].mxu1 }
 0xa92   : > { %v1193_v59 = vadd.f32 %v2155_v56, %v1192_v57  ;;  %v2379_v60 = vpop.f32.mrb[11].mxu0  ;;  %v2401_v61 = vpop.f32.mrb[9].mxu1  ;;  %v1341_v6 = vadd.f32 %v2159_v0, %v1340_v58  ;;  %v1097_v57 = vld [vmem:[%s3162_s2 + $0x160] sm:$0xff]  ;;  %v1098_v58 = vld [vmem:[%s3162_s2 + $0x168] sm:$0xff] }
 0xa93   : > { %v1099_v60 = vld [vmem:[%s3162_s2 + $0x170] sm:$0xff]  ;;  %v1100_v61 = vld [vmem:[%s3162_s2 + $0x178] sm:$0xff]  ;;  %v1102_v0 = vld [vmem:[%s3162_s2 + $0x188] sm:$0xff] }
 0xa94   : > { %v1344_v62 = vmul.f32 %v2790_v32, %v1193_v59  ;;  %v1345_v7 = vmul.f32 %v2793_v39, %v1193_v59  ;;  %v2553_v59 = vpack.c.bf16 %v1098_v58, %v1097_v57  ;;  %v1831_v58 = vld [vmem:[%s3164_s4 + $0x63] sm:$0xff] }
 0xa96   : > { %2404 = vmatprep.mubr.msk.f32.mxu0 %vm370_vm3, %v1344_v62  ;;  %v2556_v62 = vpack.c.bf16 %v1100_v61, %v1099_v60 }
 0xa99   : > { %v1266_v2 = vpop.f32.mrb[12].mxu0 }
 0xa9a   : > { %v1267_v3 = vadd.f32 %v2157_v63, %v1266_v2  ;;  %v2390_v4 = vpop.f32.mrb[13].mxu0  ;;  %v1101_v63 = vld [vmem:[%s3162_s2 + $0x180] sm:$0xff]  ;;  %v1103_v2 = vld [vmem:[%s3162_s2 + $0x190] sm:$0xff] }
 0xa9b   : > { %v1104_v4 = vld [vmem:[%s3162_s2 + $0x198] sm:$0xff] }
 0xa9c   : > { %2402 = vmatprep.subr.msk.mxu0 %vm370_vm3, %v1267_v3 }
 0xa9d   : > { %2403 = vmatpush3.xpose.msk.msra.mxu0 %vm370_vm3, %v1267_v3  ;;  %v2559_v3 = vpack.c.bf16 %v1102_v0, %v1101_v63 }
 0xa9e   : > { %2407 = vmatprep.subr.mxu0 %v1341_v6 }
 0xaa0   : > { %2405 = vmatmul.mubr.msk.f32.vlgmr.msra.gmra.mrb[14].mxu0 %vm370_vm3, %v1345_v7  ;;  %v1105_v7 = vld [vmem:[%s3162_s2 + $0x1a0] sm:$0xff] }
 0xaa1   : > { %2408 = vmatpush3.msra.mxu0 %v1341_v6  ;;  %v2562_v6 = vpack.c.bf16 %v1104_v4, %v1103_v2  ;;  %v2174_v2 = vld [vmem:[%s3163_s3 + $0x12] ss:$0 sm:$0xff] }
 0xaa2   : > { %2552 = vmatprep.subr.bf16.mxu0 %v2653_v5 }
 0xb73   : > { %v2406_v8 = vpop.f32.mrb[14].mxu0 }
 0xb74   : > { %v1431_v9 = vmul.f32 0.25, %v2406_v8  ;;  %v1421_v10 = vpop.f32.mrb[15].mxu0  ;;  %v1106_v8 = vld [vmem:[%s3162_s2 + $0x1a8] sm:$0xff] }
 0xb75   : > { %v1430_v11 = vmul.f32 0.25, %v1421_v10 }
 0xb76   : > { %v1433_v12 = vsel %vm2811_vm10, %v1431_v9, -1e+30  ;;  %v2565_v9 = vpack.c.bf16 %v1106_v8, %v1105_v7  ;;  %v2179_v7 = vld [vmem:[%s3164_s4 + $0x73] ss:$0 sm:$0xff] }
 0xb77   : > { %v1437_v13 = vsel %vm682_vm9, %v1433_v12, -inf  ;;  %v1432_v14 = vsel %vm2806_vm8, %v1430_v11, -1e+30 }
 0xb78   : > { %1438 = vmax.xlane.f32.xlu1 %v1437_v13  ;;  %v1434_v15 = vsel %vm682_vm9, %v1432_v14, -inf }
 0xb79   : > { %1435 = vmax.xlane.f32.xlu0 %v1434_v15 }
 0xc05   : > { %v1439_v16 = vpop.xlane.xlu1 %1438 }
 0xc06   : > { %v1441_v17 = vsub.f32 %v1433_v12, %v1439_v16  ;;  %v1436_v18 = vpop.xlane.xlu0 %1435  ;;  %v1825_v16 = vld [vmem:[%s3164_s4 + $0x33] sm:$0xff] }
 0xc07   : > { %v1440_v19 = vsub.f32 %v1432_v14, %v1436_v18  ;;  %v2168_v14 = vld [vmem:[%s3163_s3 + $0xe] ss:$0 sm:$0xff]  ;;  %v2169_v18 = vld [vmem:[%s3163_s3 + $0xf] ss:$0 sm:$0xff] }
 0xc08   : > { %v1444_v20 = vmul.f32 1.442695, %v1441_v17  ;;  %v1826_v17 = vld [vmem:[%s3164_s4 + $0x3b] sm:$0xff] }
 0xc09   : > { %v1442_v21 = vmul.f32 1.442695, %v1440_v19 }
 0xc0a   : > { %2612 = vpow2.f32 %v1444_v20  ;;  %v2571_v20 = vpack.c.bf16 %v1826_v17, %v1825_v16 }
 0xc0b   : > { %2614 = vpow2.f32 %v1442_v21 }
 0xc14   : > { %v2613_v22 = vpop.eup %2612 }
 0xc15   : > { %v2615_v55 = vpop.eup %2614  ;;  %v1449_v23 = vsel %vm682_vm9, %v2613_v22, 0.0 }
 0xc16   : > { %1450 = vadd.xlane.f32.xlu1 %v1449_v23  ;;  %v1446_v52 = vsel %vm682_vm9, %v2615_v55, 0.0 }
 0xc17   : > { %1447 = vadd.xlane.f32.xlu0 %v1446_v52  ;;  %v1821_v52 = vld [vmem:[%s3164_s4 + $0x13] sm:$0xff] }
 0xc18   : > { %v2577_v26 = vpack.c.bf16 %v1822_v25, %v1821_v52 }
 0xca3   : > { %v1451_v28 = vpop.xlane.xlu1 %1450 }
 0xca4   : > { %2616 = vrcp.f32 %v1451_v28  ;;  %v1448_v30 = vpop.xlane.xlu0 %1447  ;;  %v1824_v28 = vld [vmem:[%s3164_s4 + $0x2b] sm:$0xff] }
 0xca5   : > { %2618 = vrcp.f32 %v1448_v30  ;;  %v2580_v30 = vpack.c.bf16 %v1824_v28, %v1823_v27 }
 0xcae   : > { %v2617_v31 = vpop.eup %2616 }
 0xcaf   : > { %v2619_v33 = vpop.eup %2618  ;;  %v1455_v35 = vmul.f32 %v2617_v31, %v2613_v22  ;;  %v1827_v22 = vld [vmem:[%s3164_s4 + $0x43] sm:$0xff]  ;;  %v1107_v31 = vld [vmem:[%s3162_s2 + $0x1b0] sm:$0xff] }
 0xcb0   : > { %v1454_v34 = vmul.f32 %v2619_v33, %v2615_v55  ;;  %v1828_v55 = vld [vmem:[%s3164_s4 + $0x4b] sm:$0xff]  ;;  %v1108_v33 = vld [vmem:[%s3162_s2 + $0x1b8] sm:$0xff] }
 0xcb1   : > { %v2574_v23 = vpack.c.bf16 %v1828_v55, %v1827_v22 }
 0xcb2   : > { %2409 = vmatprep.mubr.msk.f32.mxu0 %vm682_vm9, %v1454_v34  ;;  %v2170_v34 = vld [vmem:[%s3163_s3 + $0x10] ss:$0 sm:$0xff] }
 0xcb3   : > { %2410 = vmatmul.mubr.msk.f32.vlgmr.msra.gmra.mrb[16].mxu0 %vm682_vm9, %v1455_v35 }
 0xcb4   : > { %2431 = vmatprep.mubr.msk.f32.mxu0 %vm2652_vm1, %v2651_v1  ;;  %2554 = vmatpush3.bf16.msra.mxu0 %v2553_v59  ;;  %v1832_v59 = vld [vmem:[%s3164_s4 + $0x6b] sm:$0xff] }
 0xcb5   : > { %2555 = vmatprep.subr.bf16.mxu0 %v2653_v5  ;;  %v2586_v60 = vpack.c.bf16 %v1832_v59, %v1831_v58 }
 0xcb8   : > { %2557 = vmatpush3.bf16.msra.mxu0 %v2556_v62 }
 0xcb9   : > { %2570 = vmatprep.subr.bf16.mxu0 %v2653_v5 }
 0xd86   : > { %v2411_v40 = vpop.f32.mrb[16].mxu0 }
 0xd87   : > { %v1539_v41 = vmul.f32 %v2411_v40, %v2793_v39  ;;  %v1528_v42 = vpop.f32.mrb[17].mxu0 }
 0xd88   : > { %v1537_v24 = vmul.f32 %v2790_v32, %v1528_v42 }
 0xd8a   : > { %v1540_v43 = vadd.f32 %v1539_v41, %v1537_v24 }
 0xd8c   : > { %2421 = vmatmul.mubr.msk.f32.vlgmr.msra.gmra.mrb[10].mxu1 %vm370_vm3, %v1540_v43  ;;  %v2172_v43 = vld [vmem:[%s3163_s3 + $0x11] ss:$0 sm:$0xff] }
 0xd8d   : > { %2450 = vmatprep.mubr.msk.f32.mxu1 %vm2652_vm1, %v2651_v1  ;;  %2560 = vmatpush3.bf16.msra.mxu1 %v2559_v3  ;;  %v2175_v3 = vld [vmem:[%s3163_s3 + $0x13] ss:$0 sm:$0xff] }
 0xd8e   : > { %2561 = vmatprep.subr.bf16.mxu1 %v2653_v5 }
 0xd91   : > { %2563 = vmatpush3.bf16.msra.mxu1 %v2562_v6 }
 0xd92   : > { %2564 = vmatprep.subr.bf16.mxu1 %v2653_v5 }
 0xd95   : > { %2566 = vmatpush3.bf16.msra.mxu1 %v2565_v9 }
 0xd96   : > { %2567 = vmatprep.subr.bf16.mxu1 %v2653_v5 }
 0xe5f   : > { %v1614_v45 = vpop.f32.mrb[10].mxu1 }
 0xe60   : > { %v1615_v46 = vadd.f32 %v2166_v44, %v1614_v45  ;;  %v2422_v47 = vpop.f32.mrb[11].mxu1 }
 0xe62   : > { %v1618_v49 = vadd.f32 %v1615_v46, %v2961_v50 }
 0xe64   : > { %v1619_v39 = vsel %vm370_vm3, %v1618_v49, 0.0 }
 0xe65   : > { %1620 = vadd.xlane.f32.xlu0 %v1619_v39 }
 0xef2   : > { %v1621_v51 = vpop.xlane.xlu0 %1620 }
 0xef3   : > { %v1622_v32 = vmul.f32 0.03125, %v1621_v51 }
 0xef5   : > { %v1623_v53 = vsub.f32 %v1618_v49, %v1622_v32 }
 0xef7   : > { %v1624_v54 = vmul.f32 %v1623_v53, %v1623_v53 }
 0xef9   : > { %v1625_v56 = vsel %vm370_vm3, %v1624_v54, 0.0  ;;  %v1829_v54 = vld [vmem:[%s3164_s4 + $0x53] sm:$0xff] }
 0xefa   : > { %1626 = vadd.xlane.f32.xlu1 %v1625_v56  ;;  %v1830_v56 = vld [vmem:[%s3164_s4 + $0x5b] sm:$0xff] }
 0xefb   : > { %v2583_v57 = vpack.c.bf16 %v1830_v56, %v1829_v54 }
 0xf87   : > { %v1627_v10 = vpop.xlane.xlu1 %1626 }
 0xf88   : > { %v1628_v11 = vmul.f32 0.03125, %v1627_v10 }
 0xf8a   : > { %v1629_v12 = vadd.f32 1e-05, %v1628_v11 }
 0xf8c   : > { %2620 = vrsqrt.f32 %v1629_v12 }
 0xf96   : > { %v2621_v13 = vpop.eup %2620 }
 0xf97   : > { %v1631_v15 = vmul.f32 %v2621_v13, %v1623_v53 }
 0xf99   : > { %v1636_v19 = vmul.f32 %v2168_v14, %v1631_v15 }
 0xf9b   : > { %v1641_v21 = vadd.f32 %v2169_v18, %v1636_v19 }
 0xf9d   : > { %2432 = vmatmul.mubr.msk.f32.vlgmr.msra.gmra.mrb[18].mxu0 %vm370_vm3, %v1641_v21 }
 0xf9e   : > { %2572 = vmatpush3.bf16.msra.mxu0 %v2571_v20  ;;  %2461 = vmatprep.mubr.msk.f32.mxu0 %vm2652_vm1, %v2651_v1 }
 0xf9f   : > { %2573 = vmatprep.subr.bf16.mxu0 %v2653_v5 }
 0xfa2   : > { %2575 = vmatpush3.bf16.msra.mxu0 %v2574_v23 }
 0xfa3   : > { %2576 = vmatprep.subr.bf16.mxu0 %v2653_v5 }
 0xfa5   : > { %2462 = vmatmul.mubr.msk.f32.vlgmr.msra.gmra.mrb[20].mxu0 %vm370_vm3, %v2961_v50  ;;  %v2568_v50 = vpack.c.bf16 %v1108_v33, %v1107_v31 }
 0xfa6   : > { %2578 = vmatpush3.bf16.msra.mxu0 %v2577_v26  ;;  %2472 = vmatprep.mubr.msk.f32.mxu0 %vm2652_vm1, %v2651_v1 }
 0xfa7   : > { %2579 = vmatprep.subr.bf16.mxu0 %v2653_v5  ;;  %2569 = vmatpush3.bf16.msra.mxu1 %v2568_v50 }
 0xfa8   : > { %2582 = vmatprep.subr.bf16.mxu1 %v2653_v5 }
 0xfaa   : > { %2581 = vmatpush3.bf16.msra.mxu0 %v2580_v30 }
 0xfad   : > { %2473 = vmatmul.mubr.msk.f32.vlgmr.msra.gmra.mrb[22].mxu0 %vm370_vm3, %v2958_v48 }
0x1070   : > { %v1715_v35 = vpop.f32.mrb[18].mxu0 }
0x1071   : > { %v1716_v36 = vadd.f32 %v2170_v34, %v1715_v35  ;;  %v2433_v37 = vpop.f32.mrb[19].mxu0 }
0x1073   : > { %v1719_v48 = vmax.f32 %v1716_v36, 0.0 }
0x1075   : > { %2451 = vmatmul.mubr.msk.f32.vlgmr.msra.gmra.mrb[12].mxu1 %vm974_vm11, %v1719_v48 }
0x1076   : > { %2483 = vmatprep.mubr.msk.f32.mxu1 %vm2652_vm1, %v2651_v1  ;;  %2584 = vmatpush3.bf16.msra.mxu1 %v2583_v57 }
0x1077   : > { %2585 = vmatprep.subr.bf16.mxu1 %v2653_v5 }
0x1078   : > { %v1900_v38 = vpop.f32.mrb[20].mxu0 }
0x1079   : > { %v2463_v40 = vpop.f32.mrb[21].mxu0 }
0x107a   : > { %2587 = vmatpush3.bf16.msra.mxu1 %v2586_v60 }
0x1080   : > { %v1973_v41 = vpop.f32.mrb[22].mxu0 }
0x1081   : > { %v1974_v42 = vadd.f32 %v1973_v41, %v1900_v38  ;;  %v2474_v24 = vpop.f32.mrb[23].mxu0 }
0x1148   : > { %v1793_v44 = vpop.f32.mrb[12].mxu1 }
0x1149   : > { %v1794_v45 = vadd.f32 %v2172_v43, %v1793_v44  ;;  %v2452_v46 = vpop.f32.mrb[13].mxu1 }
0x114b   : > { %v1797_v47 = vadd.f32 %v1794_v45, %v1641_v21 }
0x114d   : > { %v1798_v49 = vsel %vm370_vm3, %v1797_v47, 0.0 }
0x114e   : > { %1799 = vadd.xlane.f32.xlu0 %v1798_v49 }
0x11db   : > { %v1800_v39 = vpop.xlane.xlu0 %1799 }
0x11dc   : > { %v1801_v51 = vmul.f32 0.03125, %v1800_v39 }
0x11de   : > { %v1802_v32 = vsub.f32 %v1797_v47, %v1801_v51 }
0x11e0   : > { %v1803_v1 = vmul.f32 %v1802_v32, %v1802_v32 }
0x11e2   : > { %v1804_v53 = vsel %vm370_vm3, %v1803_v1, 0.0 }
0x11e3   : > { %1805 = vadd.xlane.f32.xlu1 %v1804_v53 }
0x1270   : > { %v1806_v61 = vpop.xlane.xlu1 %1805 }
0x1271   : > { %v1807_v62 = vmul.f32 0.03125, %v1806_v61 }
0x1273   : > { %v1808_v63 = vadd.f32 1e-05, %v1807_v62 }
0x1275   : > { %2622 = vrsqrt.f32 %v1808_v63 }
0x127f   : > { %v2623_v0 = vpop.eup %2622 }
0x1280   : > { %v1810_v5 = vmul.f32 %v2623_v0, %v1802_v32 }
0x1282   : > { %v1815_v4 = vmul.f32 %v2174_v2, %v1810_v5 }
0x1284   : > { %v1820_v6 = vadd.f32 %v2175_v3, %v1815_v4 }
0x1286   : > { %2484 = vmatmul.mubr.msk.f32.vlgmr.msra.gmra.mrb[14].mxu1 %vm370_vm3, %v1820_v6 }
0x1359   : > { %v2046_v8 = vpop.f32.mrb[14].mxu1 }
0x135a   : > { %v2050_v9 = vadd.f32 %v2046_v8, %v1974_v42  ;;  %v2485_v10 = vpop.f32.mrb[15].mxu1 }
0x135c   : > { %v2055_v11 = vadd.f32 %v2179_v7, %v2050_v9 }
0x135e   : > { %v2180_v12 = vmul.f32 -1.442695, %v2055_v11 }
0x1360   : > { %2624 = vpow2.f32 %v2180_v12 }
0x136a   : > { %v2625_v13 = vpop.eup %2624 }
0x136b   : > { %v2060_v14 = vadd.f32 1.0, %v2625_v13 }
0x136d   : > { %2626 = vrcp.f32 %v2060_v14 }
0x1377   : > { %v2627_v15 = vpop.eup %2626 }
0x1378   : > { %v2063_v16 = vsel %vm2056_vm12, %v2627_v15, %v2055_v11 }
0x1379   : > { %2064 = vst [vmem:[%s199_s14] sm:$0xff] %v2063_v16 }
0x137a PF: > { %s21_s23 = sadd.s32 1, %s2648_s23  }
0x137b   : > { %p18_p9 = scmp.ge.s32.totalorder %s21_s23, 4  }
0x137d   :  { %20 = sbr.rel (!%p18_p9) target bundleno = 16 (0x10), region = 67 }

</bundles_post_ra>
